<compile_context>
chip_gen: v7x
topology: tpu7x:2x2x1
jax: 0.10.0
libtpu: 0.0.40
codegen_flags: <defaults>
</compile_context>

<pallas_src>
import numpy as np
import jax
import jax.numpy as jnp
from jax import lax
from jax.experimental import pallas as pl
from jax.experimental.pallas import tpu as pltpu


# ----------------------------------------------------------------------------
# Pallas kernel: per-pose pairwise energy, tiled over both atom axes.
# Grid = (n_poses, n_i_tiles, n_j_tiles); j is the (innermost) reduction axis.
# Output block (1, 1, 8, 128) per (pose, i-tile) is written only at j == last.
# ----------------------------------------------------------------------------
def _pair_energy_kernel(xi_ref, xjt_ref, o_ref, acc_ref):
    i_blk = pl.program_id(1)
    j_blk = pl.program_id(2)
    last_j = pl.num_programs(2) - 1
    tile = xjt_ref.shape[2]

    @pl.when(j_blk == 0)
    def _init():
        acc_ref[...] = jnp.zeros_like(acc_ref)

    def tile_contrib():
        xi = xi_ref[0]          # (T, 3)   i-atoms of this tile
        xjt = xjt_ref[0]        # (3, T)   j-atoms, lane-dense
        # Gram matrix on the MXU: (T,3) x (3,T) -> (T,T)
        gram = lax.dot_general(
            xi, xjt,
            dimension_numbers=(((1,), (0,)), ((), ())),
            preferred_element_type=jnp.float32,
        )
        sq_i = jnp.sum(xi * xi, axis=1, keepdims=True)      # (T, 1)
        sq_j = jnp.sum(xjt * xjt, axis=0, keepdims=True)    # (1, T) lane row
        d2 = sq_i + sq_j - 2.0 * gram                        # (T, T)
        d2 = jnp.maximum(d2, 0.0)                            # cancellation guard
        return pl.reciprocal(1.0 + d2, approx=False)         # 1 / (1 + d2)

    def accumulate(contrib):
        # partial reduce over the i (sublane) axis only; full reduce deferred
        acc_ref[...] += jnp.sum(contrib, axis=0, keepdims=True)   # (1, T)

    @pl.when(i_blk < j_blk)                 # upper off-diagonal tile: no mask
    def _off_diag():
        accumulate(tile_contrib())

    @pl.when(i_blk == j_blk)                # diagonal tile: local i < j mask
    def _diag():
        c = tile_contrib()
        li = lax.broadcasted_iota(jnp.int32, (tile, tile), 0)
        lj = lax.broadcasted_iota(jnp.int32, (tile, tile), 1)
        accumulate(jnp.where(li < lj, c, 0.0))

    # (i_blk > j_blk): strictly-lower tile -> skipped entirely.

    @pl.when(j_blk == last_j)
    def _store():
        e = jnp.sum(acc_ref[...])                            # scalar, once per (p, i)
        o_ref[...] = jnp.broadcast_to(e, o_ref.shape)


def intra_total_pallas(coords, tile=None):
    """Synthetic score_system.intra_total: (P, N, 3) -> (P,) per-pose energy."""
    coords = coords.astype(jnp.float32)
    P, N, _ = coords.shape
    if tile is None:
        tile = 256 if N % 256 == 0 else 128   # 256 fills v6e/v7x MXU; 128 ok on v5e
    # TODO(synk): atom counts not a multiple of 128 would need padding + validity mask.
    assert tile % 128 == 0 and N % tile == 0, "N must be a multiple of the tile size"
    n_t = N // tile

    coords_t = jnp.transpose(coords, (0, 2, 1))   # (P, 3, N): lane-dense j side

    out = pl.pallas_call(
        _pair_energy_kernel,
        out_shape=jax.ShapeDtypeStruct((P, n_t, 8, 128), jnp.float32),
        grid_spec=pltpu.PrefetchScalarGridSpec(
            num_scalar_prefetch=0,
            grid=(P, n_t, n_t),
            in_specs=[
                pl.BlockSpec((1, tile, 3), lambda p, i, j: (p, i, 0)),   # xi tile
                pl.BlockSpec((1, 3, tile), lambda p, i, j: (p, 0, j)),   # xj tile (lane-dense)
            ],
            out_specs=pl.BlockSpec((1, 1, 8, 128), lambda p, i, j: (p, i, 0, 0)),
            scratch_shapes=[pltpu.VMEM((1, tile), jnp.float32)],          # per-lane accumulator
        ),
        compiler_params=pltpu.CompilerParams(
            dimension_semantics=("parallel", "parallel", "arbitrary"),
            vmem_limit_bytes=32 * 1024 * 1024,   # well above the ~1 MiB footprint; safe on v5e/v6e/v7x
        ),
    )(coords, coords_t)

    # tiny final reduction over i-tiles (one scalar per (pose, i-tile))
    return jnp.sum(out[:, :, 0, 0], axis=1)


# ----------------------------------------------------------------------------
# DOFMaskingFunc.forward:  bg[mask] = fg   (glue, static host mask)
# TODO(synk): backward (DOFMaskingFunc.backward) not needed for forward-only port.
# ----------------------------------------------------------------------------
def dof_masking(fg, mask, bg):
    if mask is None:
        # torch: bg[None] = fg  -> bg becomes a copy of fg
        return fg
    mask_np = np.asarray(mask)
    idx = np.flatnonzero(mask_np)            # mask is static (host) data
    flat = bg.reshape(-1)
    flat = flat.at[jnp.asarray(idx)].set(fg.reshape(-1))
    return flat.reshape(bg.shape)


# ----------------------------------------------------------------------------
# CartesianEnergyNetwork equivalent
# ----------------------------------------------------------------------------
class CartesianEnergyNetwork:
    def __init__(self, coords, coord_mask=None):
        self.coord_mask = coord_mask
        self.full_coords = coords
        if coord_mask is None:
            self.masked_coords = coords                              # the "Parameter"
        else:
            self.masked_coords = coords[np.asarray(coord_mask)]      # 1D selected DOFs

    def forward(self):
        self.full_coords = dof_masking(
            self.masked_coords, self.coord_mask, self.full_coords)
        return intra_total_pallas(self.full_coords)


# ----------------------------------------------------------------------------
# Pure-JAX reference (for correctness check)
# ----------------------------------------------------------------------------
def intra_total_ref(coords):
    P, N, _ = coords.shape
    diff = coords[:, :, None, :] - coords[:, None, :, :]
    d2 = jnp.sum(diff * diff, axis=-1)
    i = jnp.arange(N)[:, None]
    j = jnp.arange(N)[None, :]
    m = (i < j)[None]
    return jnp.sum(jnp.where(m, 1.0 / (1.0 + d2), 0.0), axis=(1, 2))


if __name__ == "__main__":
    P, N = 2, 512                      # 2 poses x 512 atoms -> 2x2 tiles of 256
    key = jax.random.PRNGKey(0)
    k_coords, k_mask, k_fg = jax.random.split(key, 3)

    coords = 3.0 * jax.random.normal(k_coords, (P, N, 3), dtype=jnp.float32)
    coord_mask = np.asarray(jax.random.uniform(k_mask, (P, N, 3)) > 0.5)

    net = CartesianEnergyNetwork(coords, coord_mask)
    # perturb the "parameter" (masked DOFs), like an optimizer step
    net.masked_coords = net.masked_coords + 0.1 * jax.random.normal(
        k_fg, net.masked_coords.shape, dtype=jnp.float32)

    energies = jax.block_until_ready(net.forward())

    # reference: scatter + dense pairwise energy in plain JAX
    full_ref = dof_masking(net.masked_coords, coord_mask, coords)
    ref = intra_total_ref(full_ref)
    np.testing.assert_allclose(np.asarray(energies), np.asarray(ref),
                               rtol=2e-4, atol=1e-3)

    print("KERNEL_OK")
</pallas_src>

<mosaic_0001>
module attributes {stable_mosaic.version = 11 : i64} {
  func.func @_pair_energy_kernel(%arg0: i32, %arg1: i32, %arg2: i32, %arg3: memref<1x256x3xf32, #tpu.memory_space<vmem>>, %arg4: memref<1x3x256xf32, #tpu.memory_space<vmem>>, %arg5: memref<1x1x8x128xf32, #tpu.memory_space<vmem>>, %arg6: memref<1x256xf32, #tpu.memory_space<vmem>>) attributes {dimension_semantics = [#tpu.dimension_semantics<parallel>, #tpu.dimension_semantics<parallel>, #tpu.dimension_semantics<arbitrary>], iteration_bounds = array<i64: 2, 2, 2>, scalar_prefetch = 0 : i64, scratch_operands = 1 : i64, tpu.core_type = #tpu.core_type<tc>, window_params = [{transform_indices = @transform_0, window_bounds = array<i64: 1, 256, 3>}, {transform_indices = @transform_1, window_bounds = array<i64: 1, 3, 256>}, {transform_indices = @transform_2, window_bounds = array<i64: 1, 1, 8, 128>}]} {
    %c0_i32 = arith.constant 0 : i32
    %0 = arith.cmpi eq, %arg2, %c0_i32 : i32
    %1 = arith.extui %0 : i1 to i32
    %c0_i32_0 = arith.constant 0 : i32
    %2 = arith.cmpi ne, %1, %c0_i32_0 : i32
    scf.if %2 {
      %cst = arith.constant 0.000000e+00 : f32
      %12 = vector.broadcast %cst : f32 to vector<1x256xf32>
      %c0 = arith.constant 0 : index
      %c0_4 = arith.constant 0 : index
      %13 = vector.load %arg6[%c0, %c0_4] : memref<1x256xf32, #tpu.memory_space<vmem>>, vector<1x256xf32>
      tpu.vector_store %arg6[%c0, %c0_4], %12 {strides = array<i32>} : memref<1x256xf32, #tpu.memory_space<vmem>>, vector<1x256xf32>,
    } else {
    }
    %3 = arith.cmpi slt, %arg1, %arg2 : i32
    %4 = arith.extui %3 : i1 to i32
    %c0_i32_1 = arith.constant 0 : i32
    %5 = arith.cmpi ne, %4, %c0_i32_1 : i32
    scf.if %5 {
      %c0 = arith.constant 0 : index
      %c0_4 = arith.constant 0 : index
      %c0_5 = arith.constant 0 : index
      %12 = vector.load %arg3[%c0, %c0_4, %c0_5] : memref<1x256x3xf32, #tpu.memory_space<vmem>>, vector<1x256x3xf32>
      %13 = vector.shape_cast %12 : vector<1x256x3xf32> to vector<256x3xf32>
      %c0_6 = arith.constant 0 : index
      %c0_7 = arith.constant 0 : index
      %c0_8 = arith.constant 0 : index
      %14 = vector.load %arg4[%c0_6, %c0_7, %c0_8] : memref<1x3x256xf32, #tpu.memory_space<vmem>>, vector<1x3x256xf32>
      %15 = vector.shape_cast %14 : vector<1x3x256xf32> to vector<3x256xf32>
      %cst = arith.constant dense<0.000000e+00> : vector<256x256xf32>
      %16 = tpu.matmul %13, %15, %cst {dimension_numbers = #tpu.dot_dimension_numbers<[1], [0], [0], [1], [0, 0, 1, 1], [], []>} : vector<256x3xf32>, vector<3x256xf32>, vector<256x256xf32> -> vector<256x256xf32>
      %17 = arith.mulf %13, %13 : vector<256x3xf32>
      %cst_9 = arith.constant dense<0.000000e+00> : vector<256xf32>
      %18 = vector.multi_reduction <add>, %17, %cst_9 [1] : vector<256x3xf32> to vector<256xf32>
      %19 = vector.shape_cast %18 : vector<256xf32> to vector<256x1xf32>
      %20 = arith.mulf %15, %15 : vector<3x256xf32>
      %cst_10 = arith.constant dense<0.000000e+00> : vector<256xf32>
      %21 = vector.multi_reduction <add>, %20, %cst_10 [0] : vector<3x256xf32> to vector<256xf32>
      %22 = vector.shape_cast %21 : vector<256xf32> to vector<1x256xf32>
      %23 = vector.broadcast %19 : vector<256x1xf32> to vector<256x256xf32>
      %24 = vector.broadcast %22 : vector<1x256xf32> to vector<256x256xf32>
      %25 = arith.addf %23, %24 : vector<256x256xf32>
      %cst_11 = arith.constant 2.000000e+00 : f32
      %26 = vector.broadcast %cst_11 : f32 to vector<256x256xf32>
      %27 = arith.mulf %26, %16 : vector<256x256xf32>
      %28 = arith.subf %25, %27 : vector<256x256xf32>
      %cst_12 = arith.constant 0.000000e+00 : f32
      %29 = vector.broadcast %cst_12 : f32 to vector<256x256xf32>
      %30 = arith.maximumf %28, %29 : vector<256x256xf32>
      %cst_13 = arith.constant 1.000000e+00 : f32
      %31 = vector.broadcast %cst_13 : f32 to vector<256x256xf32>
      %32 = arith.addf %31, %30 : vector<256x256xf32>
      %33 = tpu.reciprocal %32 : vector<256x256xf32> -> vector<256x256xf32>
      %c0_14 = arith.constant 0 : index
      %c0_15 = arith.constant 0 : index
      %34 = vector.load %arg6[%c0_14, %c0_15] : memref<1x256xf32, #tpu.memory_space<vmem>>, vector<1x256xf32>
      %cst_16 = arith.constant dense<0.000000e+00> : vector<256xf32>
      %35 = vector.multi_reduction <add>, %33, %cst_16 [0] : vector<256x256xf32> to vector<256xf32>
      %36 = vector.shape_cast %35 : vector<256xf32> to vector<1x256xf32>
      %37 = arith.addf %34, %36 : vector<1x256xf32>
      %c0_17 = arith.constant 0 : index
      %c0_18 = arith.constant 0 : index
      %38 = vector.load %arg6[%c0_17, %c0_18] : memref<1x256xf32, #tpu.memory_space<vmem>>, vector<1x256xf32>
      tpu.vector_store %arg6[%c0_17, %c0_18], %37 {strides = array<i32>} : memref<1x256xf32, #tpu.memory_space<vmem>>, vector<1x256xf32>,
    } else {
    }
    %6 = arith.cmpi eq, %arg1, %arg2 : i32
    %7 = arith.extui %6 : i1 to i32
    %c0_i32_2 = arith.constant 0 : i32
    %8 = arith.cmpi ne, %7, %c0_i32_2 : i32
    scf.if %8 {
      %c0 = arith.constant 0 : index
      %c0_4 = arith.constant 0 : index
      %c0_5 = arith.constant 0 : index
      %12 = vector.load %arg3[%c0, %c0_4, %c0_5] : memref<1x256x3xf32, #tpu.memory_space<vmem>>, vector<1x256x3xf32>
      %13 = vector.shape_cast %12 : vector<1x256x3xf32> to vector<256x3xf32>
      %c0_6 = arith.constant 0 : index
      %c0_7 = arith.constant 0 : index
      %c0_8 = arith.constant 0 : index
      %14 = vector.load %arg4[%c0_6, %c0_7, %c0_8] : memref<1x3x256xf32, #tpu.memory_space<vmem>>, vector<1x3x256xf32>
      %15 = vector.shape_cast %14 : vector<1x3x256xf32> to vector<3x256xf32>
      %cst = arith.constant dense<0.000000e+00> : vector<256x256xf32>
      %16 = tpu.matmul %13, %15, %cst {dimension_numbers = #tpu.dot_dimension_numbers<[1], [0], [0], [1], [0, 0, 1, 1], [], []>} : vector<256x3xf32>, vector<3x256xf32>, vector<256x256xf32> -> vector<256x256xf32>
      %17 = arith.mulf %13, %13 : vector<256x3xf32>
      %cst_9 = arith.constant dense<0.000000e+00> : vector<256xf32>
      %18 = vector.multi_reduction <add>, %17, %cst_9 [1] : vector<256x3xf32> to vector<256xf32>
      %19 = vector.shape_cast %18 : vector<256xf32> to vector<256x1xf32>
      %20 = arith.mulf %15, %15 : vector<3x256xf32>
      %cst_10 = arith.constant dense<0.000000e+00> : vector<256xf32>
      %21 = vector.multi_reduction <add>, %20, %cst_10 [0] : vector<3x256xf32> to vector<256xf32>
      %22 = vector.shape_cast %21 : vector<256xf32> to vector<1x256xf32>
      %23 = vector.broadcast %19 : vector<256x1xf32> to vector<256x256xf32>
      %24 = vector.broadcast %22 : vector<1x256xf32> to vector<256x256xf32>
      %25 = arith.addf %23, %24 : vector<256x256xf32>
      %cst_11 = arith.constant 2.000000e+00 : f32
      %26 = vector.broadcast %cst_11 : f32 to vector<256x256xf32>
      %27 = arith.mulf %26, %16 : vector<256x256xf32>
      %28 = arith.subf %25, %27 : vector<256x256xf32>
      %cst_12 = arith.constant 0.000000e+00 : f32
      %29 = vector.broadcast %cst_12 : f32 to vector<256x256xf32>
      %30 = arith.maximumf %28, %29 : vector<256x256xf32>
      %cst_13 = arith.constant 1.000000e+00 : f32
      %31 = vector.broadcast %cst_13 : f32 to vector<256x256xf32>
      %32 = arith.addf %31, %30 : vector<256x256xf32>
      %33 = tpu.reciprocal %32 : vector<256x256xf32> -> vector<256x256xf32>
      %34 = tpu.iota {dimensions = array<i32: 0>} : vector<256x256xi32>
      %35 = tpu.iota {dimensions = array<i32: 1>} : vector<256x256xi32>
      %36 = arith.cmpi slt, %34, %35 : vector<256x256xi32>
      %cst_14 = arith.constant 0.000000e+00 : f32
      %37 = vector.broadcast %cst_14 : f32 to vector<256x256xf32>
      %38 = arith.select %36, %33, %37 : vector<256x256xi1>, vector<256x256xf32>
      %c0_15 = arith.constant 0 : index
      %c0_16 = arith.constant 0 : index
      %39 = vector.load %arg6[%c0_15, %c0_16] : memref<1x256xf32, #tpu.memory_space<vmem>>, vector<1x256xf32>
      %cst_17 = arith.constant dense<0.000000e+00> : vector<256xf32>
      %40 = vector.multi_reduction <add>, %38, %cst_17 [0] : vector<256x256xf32> to vector<256xf32>
      %41 = vector.shape_cast %40 : vector<256xf32> to vector<1x256xf32>
      %42 = arith.addf %39, %41 : vector<1x256xf32>
      %c0_18 = arith.constant 0 : index
      %c0_19 = arith.constant 0 : index
      %43 = vector.load %arg6[%c0_18, %c0_19] : memref<1x256xf32, #tpu.memory_space<vmem>>, vector<1x256xf32>
      tpu.vector_store %arg6[%c0_18, %c0_19], %42 {strides = array<i32>} : memref<1x256xf32, #tpu.memory_space<vmem>>, vector<1x256xf32>,
    } else {
    }
    %c1_i32 = arith.constant 1 : i32
    %9 = arith.cmpi eq, %arg2, %c1_i32 : i32
    %10 = arith.extui %9 : i1 to i32
    %c0_i32_3 = arith.constant 0 : i32
    %11 = arith.cmpi ne, %10, %c0_i32_3 : i32
    scf.if %11 {
      %c0 = arith.constant 0 : index
      %c0_4 = arith.constant 0 : index
      %12 = vector.load %arg6[%c0, %c0_4] : memref<1x256xf32, #tpu.memory_space<vmem>>, vector<1x256xf32>
      %13 = vector.shape_cast %12 : vector<1x256xf32> to vector<1x1x256xf32>
      %cst = arith.constant dense<0.000000e+00> : vector<1xf32>
      %14 = vector.multi_reduction <add>, %13, %cst [1, 2] : vector<1x1x256xf32> to vector<1xf32>
      %15 = vector.shape_cast %14 : vector<1xf32> to vector<1x1x1xf32>
      %16 = vector.extract %15[0, 0, 0] : f32 from vector<1x1x1xf32>
      %17 = vector.broadcast %16 : f32 to vector<1x1x8x128xf32>
      %c0_5 = arith.constant 0 : index
      %c0_6 = arith.constant 0 : index
      %c0_7 = arith.constant 0 : index
      %c0_8 = arith.constant 0 : index
      %18 = vector.load %arg5[%c0_5, %c0_6, %c0_7, %c0_8] : memref<1x1x8x128xf32, #tpu.memory_space<vmem>>, vector<1x1x8x128xf32>
      tpu.vector_store %arg5[%c0_5, %c0_6, %c0_7, %c0_8], %17 {strides = array<i32>} : memref<1x1x8x128xf32, #tpu.memory_space<vmem>>, vector<1x1x8x128xf32>,
    } else {
    }
    return
  }
  func.func @transform_0(%arg0: i32, %arg1: i32, %arg2: i32) -> (i32, i32, i32) {
    %c0_i32 = arith.constant 0 : i32
    %c0_i32_0 = arith.constant 0 : i32
    return %arg0, %arg1, %c0_i32 : i32, i32, i32
  }
  func.func @transform_1(%arg0: i32, %arg1: i32, %arg2: i32) -> (i32, i32, i32) {
    %c0_i32 = arith.constant 0 : i32
    %c0_i32_0 = arith.constant 0 : i32
    return %arg0, %c0_i32, %arg2 : i32, i32, i32
  }
  func.func @transform_2(%arg0: i32, %arg1: i32, %arg2: i32) -> (i32, i32, i32, i32) {
    %c0_i32 = arith.constant 0 : i32
    %c0_i32_0 = arith.constant 0 : i32
    %c0_i32_1 = arith.constant 0 : i32
    return %arg0, %arg1, %c0_i32, %c0_i32_0 : i32, i32, i32, i32
  }
}

</mosaic_0001>

<bundles_post_ra>
// kernel: tpu_custom_call.1
= control target key start
LH: loop header
LB: loop body
LE: loop exit
PB: predicated region body
PF: predicated region fallthrough
CT: control target
= control target key end

     0   :  { %7 = vsyncpa [#allocation4], 0  ;;  %s4706_s0 = inlined_call_operand.vmem [shape: f32[2,512,3], index: 0, kind: input, shape index: {}]   ;;  %s4707_s1 = inlined_call_operand.vmem [shape: f32[2,3,512], index: 1, kind: input, shape index: {}]   ;;  %s4708_s2 = inlined_call_operand.hbm [shape: f32[2,2,8,128], index: 2, kind: output, shape index: {}]  }
   0x1   :  { %9 = vsyncpa [#allocation4 + $0x1], 0  ;;  %s3137_s9 = smov 0   ;;  %s3139_s10 = smov 0  }
   0x2   :  { %s3141_s11 = smov 0   ;;  %s3143_s12 = smov 0  }
   0x3   :  { %s3145_s13 = smov 0   ;;  %s3147_s14 = smov 0  }
   0x4   :  { %s3149_s15 = smov 0   ;;  %s3151_s16 = smov 0  }
   0x5   :  { %s3153_s17 = smov 0   ;;  %s3155_s18 = smov 0  }
   0x6 LB: > { %4720 = sst [smem:[#allocation6_spill]] %s3106_s16  ;;  %s2591_s19 = sadd.s32 4294967295, %s3114_s18   ;;  %s3114_s18 = sphi %s3155_s18, %s15_s18   ;;  %s3110_s17 = sphi %s3153_s17, %s4787_s17   ;;  %s3106_s16 = sphi %s3151_s16, %s4786_s16   ;;  %s3102_s15 = sphi %s3149_s15, %s4792_s15   ;;  %s3098_s14 = sphi %s3147_s14, %s4784_s14   ;;  %s3094_s13 = sphi %s3145_s13, %s4783_s13   ;;  %s3090_s12 = sphi %s3143_s12, %s4791_s12   ;;  %s3086_s11 = sphi %s3141_s11, %s4790_s11   ;;  %s3082_s10 = sphi %s3139_s10, %s4789_s10   ;;  %s3078_s9 = sphi %s3137_s9, %s4788_s9  }
   0x7   : > { %4721 = sst [smem:[#allocation7_spill]] %s3110_s17  ;;  %s2592_s20 = sadd.s32 4294967294, %s3114_s18  }
   0x8   : > { %s27_s21 = sadd.s32 1, %s3102_s15  ;;  %s30_s22 = sadd.s32 1, %s3106_s16 }
   0x9   : > { %p28_p0 = scmp.ge.s32.totalorder %s27_s21, 2  ;;  %s34_s23 = sadd.s32 1, %s3110_s17 }
   0xa   : > { %p109_p1 = scmp.ne.s32.totalorder %s3086_s11, %s3082_s10  ;;  %p110_p2 = scmp.eq.s32.totalorder %s2591_s19, 7 }
   0xb   : > { %s4794_s21 = smov (%p28_p0, %s27_s21), 0  ;;  %s4796_s22 = smov (!%p28_p0, %s30_s22), %s3106_s16 }
   0xc   : > { %4722 = sst [smem:[#allocation8_spill]] %s4794_s21  ;;  %p115_p3 = scmp.ne.s32.totalorder %s3082_s10, %s3078_s9 }
   0xd   : > { %p32_p4 = scmp.ge.s32.totalorder %s4796_s22, 2  ;;  %p116_p5 = scmp.eq.s32.totalorder %s2592_s20, 7 }
   0xe   : > { %p3199_p6 = por %p110_p2, %p109_p1  ;;  %p2595_p8 = scmp.ge.s32.totalorder %s3114_s18, 1 }
   0xf   : > { %s4798_s22 = smov (%p32_p4, %s4796_s22), 0  ;;  %s4800_s23 = smov (!%p32_p4, %s34_s23), %s3110_s17 }
  0x10   : > { %4724 = sst [smem:[#allocation9_spill]] %s4798_s22  ;;  %p3206_p7 = por %p116_p5, %p115_p3 }
  0x11   : > { %p36_p9 = scmp.ge.s32.totalorder %s4800_s23, 2  ;;  %p160_p10 = scmp.lt.s32.totalorder %s3114_s18, 9 }
  0x12   : > { %s95_s26 = ssub.s32 %s3106_s16, %s4798_s22  ;;  %s99_s29 = sadd.s32 1, %s3086_s11 }
  0x13   : > { %s4802_s23 = smov (%p36_p9, %s4800_s23), 0  ;;  %p161_p11 = pnand %p2595_p8, %p160_p10 }
  0x14   : > { %4726 = sst [smem:[#allocation10_spill]] %s4802_s23  ;;  %s94_s27 = ssub.s32 %s3110_s17, %s4802_s23 }
  0x15   : > { %s96_s28 = sor.u32 %s95_s26, %s94_s27  ;;  %164 = sbr.rel (%p161_p11) target bundleno = 1011 (0x3f3), region = 28 }
  0x16   : > { %p97_p12 = scmp.eq.s32.totalorder %s96_s28, 0  ;;  %s4710_s3 = sand.u32 (!%p161_p11), 1, %s3082_s10  }
  0x17   : > { %s2597_s4 = sshll.u32 (!%p161_p11), %s3094_s13, 5  ;;  %s3226_s5 = sshll.u32 (!%p161_p11), %s4710_s3, 3 }
  0x18   : > { %s3220_s30 = scalar_select %p97_p12, %s3086_s11, %s99_s29  }
  0x19   : > { %p196_p13 = scmp.lt.s32.totalorder (!%p161_p11), %s3098_s14, 1  ;;  %p198_p0 = scmp.lt.s32.totalorder (!%p161_p11), %s2597_s4, 63 }
  0x1a   : > { %s2600_s8 = sshll.u32 (!%p161_p11), %s3090_s12, 1  ;;  %s194_s16 = scalar_lea.vmem (!%p161_p11), [#allocation3], %s3226_s5 }
  0x1b   : > { %p208_p1 = scmp.lt.s32.totalorder (!%p161_p11), %s2600_s8, 3  ;;  %p2603_p2 = scmp.ne.s32.totalorder (!%p161_p11), %s3090_s12, 0 }
  0x1c   : > { %s197_s6 = scalar_select %p196_p13, %s3098_s14, 1 }
  0x1d   : > { %s4804_s4 = smov (!%p198_p0, %s2597_s4), 63  ;;  %s4806_s8 = smov (!%p208_p1, %s2600_s8), 3 }
  0x1e   : > { %s2598_s7 = sshll.u32 %s197_s6, 6  ;;  %s2601_s29 = sshll.u32 %s197_s6, 2  ;;  %v219_v0 = vlaneseq (!%p2603_p2)  ;;  %v3116_v1 = vmov (!%p2603_p2), 0.0  }
  0x1f   : > { %s201_s19 = sadd.s32 %s2598_s7, %s4804_s4  ;;  %s211_s23 = sadd.s32 %s2601_s29, %s4806_s8 }
  0x20   : > { %s2599_s20 = sshll.u32 %s201_s19, 3  ;;  %s2602_s3 = sshll.u32 %s211_s23, 2  ;;  %vm221_vm0 = vcmp.lt.s32.totalorder (!%p2603_p2), %v219_v0, 256 }
  0x21   : > { %s3234_s28 = scalar_lea.vmem %s4706_s0, %s2599_s20  ;;  %s3239_s17 = scalar_lea.vmem %s4707_s1, %s2602_s3  ;;  %223 = vst.msk [vmem:[#allocation2] sm:$0x3] (!%p2603_p2), %vm221_vm0, %v3116_v1 }
  0x22   : > { %218 = sbr.rel (%p2603_p2) target bundleno = 41 (0x29), region = 32 }
  0x29 PF: > { %p2604_p3 = scmp.ge.s32.totalorder %s3094_s13, %s3090_s12 }
  0x2b   : > { %227 = sbr.rel (%p2604_p3) target bundleno = 404 (0x194), region = 36 }
  0x32   : > { %v260_v2 = vld [vmem:[%s3239_s17] sm:$0x77]  ;;  %vm360_vm1 = vcmask 1042432   ;;  %v3117_v5 = vmov 0.0   ;;  %v230_v6 = vld [vmem:[%s3234_s28 + $0x10] sm:$0xff]  ;;  %vm263_vm2 = vcmask 23552  }
  0x33   : > { %v228_v3 = vld [vmem:[%s3234_s28] sm:$0xff]  ;;  %v262_v4 = vcombine.high %v260_v2, %v260_v2  ;;  %429 = vmatprep.mubr.f32.mxu0 %v3117_v5  ;;  %525 = vmatprep.mubr.f32.mxu1 %v3117_v5  ;;  %v624_v8 = vmul.f32 %v230_v6, %v230_v6  ;;  %v229_v9 = vld [vmem:[%s3234_s28 + $0x8] sm:$0xff]  ;;  %v231_v10 = vld [vmem:[%s3234_s28 + $0x18] sm:$0xff]  ;;  %v750_v30 = vmul.f32 %v260_v2, %v260_v2 }
  0x34   : > { %v622_v7 = vmul.f32 %v228_v3, %v228_v3  ;;  %v3255_v11 = vld [vmem:[%s3234_s28 + $0x80] sm:$0xff]  ;;  %v623_v14 = vmul.f32 %v229_v9, %v229_v9  ;;  %v625_v15 = vmul.f32 %v231_v10, %v231_v10  ;;  %v3267_v16 = vld [vmem:[%s3234_s28 + $0x88] sm:$0xff]  ;;  %v3283_v23 = vld [vmem:[%s3234_s28 + $0x90] sm:$0xff] }
  0x35   : > { %2605 = vmatprep.subr.msk.mxu0 %vm360_vm1, %v262_v4  ;;  %2680 = vmatprep.subr.msk.mxu1 %vm360_vm1, %v262_v4  ;;  %v660_v13 = vsel %vm263_vm2, %v624_v8, 0.0  ;;  %v232_v17 = vld [vmem:[%s3234_s28 + $0x20] sm:$0xff]  ;;  %v3271_v18 = vld [vmem:[%s3234_s28 + $0x28] sm:$0xff]  ;;  %v3286_v24 = vld [vmem:[%s3234_s28 + $0x30] sm:$0xff]  ;;  %v752_v38 = vcombine.high %v750_v30, %v750_v30  ;;  %v3321_v39 = vsel %vm360_vm1, %v750_v30, 0.0  ;;  %v638_v1 = vmul.f32 %v3255_v11, %v3255_v11 }
  0x36   : > { %2606 = vmatpush1.msk.msra.mxu0 %vm360_vm1, %v260_v2  ;;  %2681 = vmatpush1.msk.msra.mxu1 %vm360_vm1, %v260_v2  ;;  %v654_v12 = vsel %vm263_vm2, %v622_v7, 0.0  ;;  %v657_v19 = vsel %vm263_vm2, %v623_v14, 0.0  ;;  %v663_v20 = vsel %vm263_vm2, %v625_v15, 0.0  ;;  %v626_v21 = vmul.f32 %v232_v17, %v232_v17  ;;  %v3289_v25 = vld [vmem:[%s3234_s28 + $0x38] sm:$0xff]  ;;  %v3306_v32 = vld [vmem:[%s3234_s28 + $0x40] sm:$0xff]  ;;  %v3309_v33 = vld [vmem:[%s3234_s28 + $0x48] sm:$0xff] }
  0x37   : > { %2607 = vmatmul.mubr.msk.f32.vlgmr.msra.gmra.mrb[0].mxu0 %vm263_vm2, %v228_v3  ;;  %2623 = vmatmul.mubr.msk.f32.vlgmr.msra.gmra.mrb[0].mxu1 %vm263_vm2, %v3255_v11  ;;  %v627_v22 = vmul.f32 %v3271_v18, %v3271_v18  ;;  %v628_v28 = vmul.f32 %v3286_v24, %v3286_v24  ;;  %v629_v29 = vmul.f32 %v3289_v25, %v3289_v25  ;;  %v3303_v31 = vld [vmem:[%s3234_s28 + $0x98] sm:$0xff]  ;;  %v3326_v40 = vld [vmem:[%s3234_s28 + $0xa0] sm:$0xff]  ;;  %v3329_v41 = vld [vmem:[%s3234_s28 + $0x50] sm:$0xff]  ;;  %v3335_v43 = vsel %vm360_vm1, %v752_v38, 0.0 }
  0x38   : > { %435 = vmatprep.mubr.f32.mxu0 %v3117_v5  ;;  %531 = vmatprep.mubr.f32.mxu1 %v3117_v5  ;;  %v666_v26 = vsel %vm263_vm2, %v626_v21, 0.0  ;;  %v630_v36 = vmul.f32 %v3306_v32, %v3306_v32  ;;  %v631_v37 = vmul.f32 %v3309_v33, %v3309_v33  ;;  %v3332_v42 = vld [vmem:[%s3234_s28 + $0x58] sm:$0xff]  ;;  %v632_v46 = vmul.f32 %v3329_v41, %v3329_v41  ;;  %v249_v48 = vld [vmem:[%s3234_s28 + $0xa8] sm:$0xff]  ;;  %v3350_v49 = vld [vmem:[%s3234_s28 + $0x60] sm:$0xff] }
  0x39   : > { %655 = vadd.xlane.f32.xlu0 %v654_v12  ;;  %661 = vadd.xlane.f32.xlu1 %v660_v13  ;;  %v669_v27 = vsel %vm263_vm2, %v627_v22, 0.0  ;;  %v672_v34 = vsel %vm263_vm2, %v628_v28, 0.0  ;;  %v675_v35 = vsel %vm263_vm2, %v629_v29, 0.0  ;;  %v633_v47 = vmul.f32 %v3332_v42, %v3332_v42  ;;  %v3353_v50 = vld [vmem:[%s3234_s28 + $0x68] sm:$0xff]  ;;  %v250_v55 = vld [vmem:[%s3234_s28 + $0xb0] sm:$0xff]  ;;  %v3371_v57 = vld [vmem:[%s3234_s28 + $0x78] sm:$0xff] }
  0x3a   : > { %v678_v44 = vsel %vm263_vm2, %v630_v36, 0.0  ;;  %v681_v45 = vsel %vm263_vm2, %v631_v37, 0.0  ;;  %v684_v51 = vsel %vm263_vm2, %v632_v46, 0.0  ;;  %v634_v53 = vmul.f32 %v3350_v49, %v3350_v49  ;;  %v3368_v56 = vld [vmem:[%s3234_s28 + $0x70] sm:$0xff]  ;;  %v251_v62 = vld [vmem:[%s3234_s28 + $0xb8] sm:$0xff]  ;;  %v252_v3 = vld [vmem:[%s3234_s28 + $0xc0] sm:$0xff] }
  0x3b   : > { %2608 = vmatmul.mubr.msk.f32.gmra.mrb[2].mxu0 %vm263_vm2, %v229_v9  ;;  %2624 = vmatmul.mubr.msk.f32.gmra.mrb[2].mxu1 %vm263_vm2, %v3267_v16  ;;  %v687_v52 = vsel %vm263_vm2, %v633_v47, 0.0  ;;  %v635_v54 = vmul.f32 %v3353_v50, %v3353_v50  ;;  %v636_v60 = vmul.f32 %v3368_v56, %v3368_v56  ;;  %v637_v61 = vmul.f32 %v3371_v57, %v3371_v57  ;;  %v253_v9 = vld [vmem:[%s3234_s28 + $0xc8] sm:$0xff]  ;;  %v254_v14 = vld [vmem:[%s3234_s28 + $0xd0] sm:$0xff] }
  0x3c   : > { %441 = vmatprep.mubr.f32.mxu0 %v3117_v5  ;;  %537 = vmatprep.mubr.f32.mxu1 %v3117_v5  ;;  %v690_v58 = vsel %vm263_vm2, %v634_v53, 0.0  ;;  %v639_v2 = vmul.f32 %v3267_v16, %v3267_v16  ;;  %v702_v4 = vsel %vm263_vm2, %v638_v1, 0.0  ;;  %v640_v7 = vmul.f32 %v3283_v23, %v3283_v23  ;;  %v257_v29 = vld [vmem:[%s3234_s28 + $0xe8] sm:$0xff] }
  0x3d   : > { %658 = vadd.xlane.f32.xlu0 %v657_v19  ;;  %664 = vadd.xlane.f32.xlu1 %v663_v20  ;;  %v693_v59 = vsel %vm263_vm2, %v635_v54, 0.0  ;;  %v696_v63 = vsel %vm263_vm2, %v636_v60, 0.0  ;;  %v699_v0 = vsel %vm263_vm2, %v637_v61, 0.0  ;;  %v641_v8 = vmul.f32 %v3303_v31, %v3303_v31  ;;  %v255_v19 = vld [vmem:[%s3234_s28 + $0xd8] sm:$0xff] }
  0x3e   : > { %v642_v12 = vmul.f32 %v3326_v40, %v3326_v40  ;;  %v643_v13 = vmul.f32 %v249_v48, %v249_v48  ;;  %v646_v22 = vmul.f32 %v252_v3, %v252_v3  ;;  %v649_v28 = vmul.f32 %v255_v19, %v255_v19 }
  0x3f   : > { %2609 = vmatmul.mubr.msk.f32.gmra.mrb[4].mxu0 %vm263_vm2, %v230_v6  ;;  %2625 = vmatmul.mubr.msk.f32.gmra.mrb[4].mxu1 %vm263_vm2, %v3283_v23  ;;  %v705_v6 = vsel %vm263_vm2, %v639_v2, 0.0  ;;  %v711_v11 = vsel %vm263_vm2, %v641_v8, 0.0  ;;  %v647_v23 = vmul.f32 %v253_v9, %v253_v9  ;;  %v755_v54 = vrot.slane %v3321_v39, 4 }
  0x40   : > { %447 = vmatprep.mubr.f32.mxu0 %v3117_v5  ;;  %543 = vmatprep.mubr.f32.mxu1 %v3117_v5  ;;  %v714_v15 = vsel %vm263_vm2, %v642_v12, 0.0  ;;  %v717_v16 = vsel %vm263_vm2, %v643_v13, 0.0 }
  0x41   : > { %667 = vadd.xlane.f32.xlu0 %v666_v26  ;;  %670 = vadd.xlane.f32.xlu1 %v669_v27  ;;  %v729_v26 = vsel %vm263_vm2, %v647_v23, 0.0  ;;  %v648_v27 = vmul.f32 %v254_v14, %v254_v14 }
  0x43   : > { %2610 = vmatmul.mubr.msk.f32.gmra.mrb[6].mxu0 %vm263_vm2, %v231_v10  ;;  %2626 = vmatmul.mubr.msk.f32.gmra.mrb[6].mxu1 %vm263_vm2, %v3303_v31  ;;  %v708_v10 = vsel %vm263_vm2, %v640_v7, 0.0  ;;  %v732_v30 = vsel %vm263_vm2, %v648_v27, 0.0  ;;  %v735_v31 = vsel %vm263_vm2, %v649_v28, 0.0 }
  0x44   : > { %453 = vmatprep.mubr.f32.mxu0 %v3117_v5  ;;  %549 = vmatprep.mubr.f32.mxu1 %v3117_v5 }
  0x45   : > { %673 = vadd.xlane.f32.xlu0 %v672_v34  ;;  %676 = vadd.xlane.f32.xlu1 %v675_v35  ;;  %v258_v34 = vld [vmem:[%s3234_s28 + $0xf0] sm:$0xff]  ;;  %v259_v35 = vld [vmem:[%s3234_s28 + $0xf8] sm:$0xff] }
  0x46   : > { %v652_v38 = vmul.f32 %v258_v34, %v258_v34 }
  0x47   : > { %2611 = vmatmul.mubr.msk.f32.gmra.mrb[8].mxu0 %vm263_vm2, %v232_v17  ;;  %2627 = vmatmul.mubr.msk.f32.gmra.mrb[8].mxu1 %vm263_vm2, %v3326_v40  ;;  %v644_v17 = vmul.f32 %v250_v55, %v250_v55  ;;  %v653_v40 = vmul.f32 %v259_v35, %v259_v35 }
  0x48   : > { %459 = vmatprep.mubr.f32.mxu0 %v3117_v5  ;;  %555 = vmatprep.mubr.f32.mxu1 %v3117_v5 }
  0x49   : > { %679 = vadd.xlane.f32.xlu0 %v678_v44  ;;  %682 = vadd.xlane.f32.xlu1 %v681_v45  ;;  %v720_v20 = vsel %vm263_vm2, %v644_v17, 0.0 }
  0x4b   : > { %2612 = vmatmul.mubr.msk.f32.gmra.mrb[10].mxu0 %vm263_vm2, %v3271_v18  ;;  %2628 = vmatmul.mubr.msk.f32.gmra.mrb[10].mxu1 %vm263_vm2, %v249_v48  ;;  %v645_v18 = vmul.f32 %v251_v62, %v251_v62 }
  0x4c   : > { %465 = vmatprep.mubr.f32.mxu0 %v3117_v5  ;;  %561 = vmatprep.mubr.f32.mxu1 %v3117_v5 }
  0x4d   : > { %685 = vadd.xlane.f32.xlu0 %v684_v51  ;;  %688 = vadd.xlane.f32.xlu1 %v687_v52  ;;  %v723_v21 = vsel %vm263_vm2, %v645_v18, 0.0 }
  0x4f   : > { %2613 = vmatmul.mubr.msk.f32.gmra.mrb[12].mxu0 %vm263_vm2, %v3286_v24  ;;  %2629 = vmatmul.mubr.msk.f32.gmra.mrb[12].mxu1 %vm263_vm2, %v250_v55  ;;  %v256_v24 = vld [vmem:[%s3234_s28 + $0xe0] sm:$0xff]  ;;  %v762_v55 = vrot.slane %v3335_v43, 4 }
  0x50   : > { %471 = vmatprep.mubr.f32.mxu0 %v3117_v5  ;;  %567 = vmatprep.mubr.f32.mxu1 %v3117_v5 }
  0x51   : > { %691 = vadd.xlane.f32.xlu0 %v690_v58  ;;  %694 = vadd.xlane.f32.xlu1 %v693_v59  ;;  %v763_v58 = vadd.f32 %v762_v55, %v3335_v43 }
  0x53   : > { %2614 = vmatmul.mubr.msk.f32.gmra.mrb[14].mxu0 %vm263_vm2, %v3289_v25  ;;  %2630 = vmatmul.mubr.msk.f32.gmra.mrb[14].mxu1 %vm263_vm2, %v251_v62  ;;  %v726_v25 = vsel %vm263_vm2, %v646_v22, 0.0  ;;  %v764_v62 = vrot.slane %v763_v58, 2 }
  0x54   : > { %477 = vmatprep.mubr.f32.mxu0 %v3117_v5  ;;  %573 = vmatprep.mubr.f32.mxu1 %v3117_v5 }
  0x55   : > { %697 = vadd.xlane.f32.xlu0 %v696_v63  ;;  %700 = vadd.xlane.f32.xlu1 %v699_v0  ;;  %v765_v1 = vadd.f32 %v764_v62, %v763_v58 }
  0x57   : > { %2615 = vmatmul.mubr.msk.f32.gmra.mrb[16].mxu0 %vm263_vm2, %v3306_v32  ;;  %2631 = vmatmul.mubr.msk.f32.gmra.mrb[16].mxu1 %vm263_vm2, %v252_v3  ;;  %v650_v32 = vmul.f32 %v256_v24, %v256_v24 }
  0x58   : > { %483 = vmatprep.mubr.f32.mxu0 %v3117_v5  ;;  %579 = vmatprep.mubr.f32.mxu1 %v3117_v5 }
  0x59   : > { %703 = vadd.xlane.f32.xlu0 %v702_v4  ;;  %706 = vadd.xlane.f32.xlu1 %v705_v6  ;;  %v738_v36 = vsel %vm263_vm2, %v650_v32, 0.0  ;;  %v766_v4 = vrot.slane %v765_v1, 1 }
  0x5b   : > { %2616 = vmatmul.mubr.msk.f32.gmra.mrb[18].mxu0 %vm263_vm2, %v3309_v33  ;;  %2632 = vmatmul.mubr.msk.f32.gmra.mrb[18].mxu1 %vm263_vm2, %v253_v9  ;;  %v651_v33 = vmul.f32 %v257_v29, %v257_v29  ;;  %v3470_v9 = vadd.f32 %v766_v4, %v765_v1 }
  0x5c   : > { %489 = vmatprep.mubr.f32.mxu0 %v3117_v5  ;;  %585 = vmatprep.mubr.f32.mxu1 %v3117_v5 }
  0x5d   : > { %709 = vadd.xlane.f32.xlu0 %v708_v10  ;;  %712 = vadd.xlane.f32.xlu1 %v711_v11  ;;  %v741_v37 = vsel %vm263_vm2, %v651_v33, 0.0 }
  0x5f   : > { %2617 = vmatmul.mubr.msk.f32.gmra.mrb[20].mxu0 %vm263_vm2, %v3329_v41  ;;  %2633 = vmatmul.mubr.msk.f32.gmra.mrb[20].mxu1 %vm263_vm2, %v254_v14  ;;  %v744_v41 = vsel %vm263_vm2, %v652_v38, 0.0 }
  0x60   : > { %495 = vmatprep.mubr.f32.mxu0 %v3117_v5  ;;  %591 = vmatprep.mubr.f32.mxu1 %v3117_v5 }
  0x61   : > { %715 = vadd.xlane.f32.xlu0 %v714_v15  ;;  %718 = vadd.xlane.f32.xlu1 %v717_v16 }
  0x63   : > { %2618 = vmatmul.mubr.msk.f32.gmra.mrb[22].mxu0 %vm263_vm2, %v3332_v42  ;;  %2634 = vmatmul.mubr.msk.f32.gmra.mrb[22].mxu1 %vm263_vm2, %v255_v19  ;;  %v747_v42 = vsel %vm263_vm2, %v653_v40, 0.0 }
  0x64   : > { %501 = vmatprep.mubr.f32.mxu0 %v3117_v5  ;;  %597 = vmatprep.mubr.f32.mxu1 %v3117_v5 }
  0x65   : > { %721 = vadd.xlane.f32.xlu0 %v720_v20  ;;  %724 = vadd.xlane.f32.xlu1 %v723_v21 }
  0x67   : > { %2619 = vmatmul.mubr.msk.f32.gmra.mrb[24].mxu0 %vm263_vm2, %v3350_v49  ;;  %2635 = vmatmul.mubr.msk.f32.gmra.mrb[24].mxu1 %vm263_vm2, %v256_v24 }
  0x68   : > { %507 = vmatprep.mubr.f32.mxu0 %v3117_v5  ;;  %603 = vmatprep.mubr.f32.mxu1 %v3117_v5 }
  0x69   : > { %727 = vadd.xlane.f32.xlu0 %v726_v25  ;;  %730 = vadd.xlane.f32.xlu1 %v729_v26 }
  0x6b   : > { %2620 = vmatmul.mubr.msk.f32.gmra.mrb[26].mxu0 %vm263_vm2, %v3353_v50  ;;  %2636 = vmatmul.mubr.msk.f32.gmra.mrb[26].mxu1 %vm263_vm2, %v257_v29 }
  0x6c   : > { %513 = vmatprep.mubr.f32.mxu0 %v3117_v5  ;;  %609 = vmatprep.mubr.f32.mxu1 %v3117_v5 }
  0x6d   : > { %733 = vadd.xlane.f32.xlu0 %v732_v30  ;;  %736 = vadd.xlane.f32.xlu1 %v735_v31 }
  0x6f   : > { %2621 = vmatmul.mubr.msk.f32.gmra.mrb[28].mxu0 %vm263_vm2, %v3368_v56  ;;  %2637 = vmatmul.mubr.msk.f32.gmra.mrb[28].mxu1 %vm263_vm2, %v258_v34 }
  0x70   : > { %519 = vmatprep.mubr.f32.mxu0 %v3117_v5  ;;  %615 = vmatprep.mubr.f32.mxu1 %v3117_v5 }
  0x71   : > { %739 = vadd.xlane.f32.xlu0 %v738_v36  ;;  %742 = vadd.xlane.f32.xlu1 %v741_v37 }
  0x73   : > { %2622 = vmatmul.mubr.msk.f32.gmra.mrb[30].mxu0 %vm263_vm2, %v3371_v57  ;;  %2638 = vmatmul.mubr.msk.f32.gmra.mrb[30].mxu1 %vm263_vm2, %v259_v35  ;;  %v756_v57 = vadd.f32 %v755_v54, %v3321_v39 }
  0x75   : > { %745 = vadd.xlane.f32.xlu0 %v744_v41  ;;  %748 = vadd.xlane.f32.xlu1 %v747_v42  ;;  %v757_v60 = vrot.slane %v756_v57, 2 }
  0x77   : > { %v758_v0 = vadd.f32 %v757_v60, %v756_v57 }
  0x79   : > { %v759_v3 = vrot.slane %v758_v0, 1 }
  0x7b   : > { %v3468_v7 = vadd.f32 %v759_v3, %v758_v0 }
  0xc6   : > { %v656_v44 = vpop.xlane.xlu0 %655  ;;  %v662_v45 = vpop.xlane.xlu1 %661 }
  0xc7   : > { %v3473_v39 = vadd.f32 %v3468_v7, %v656_v44  ;;  %v3476_v11 = vadd.f32 %v3470_v9, %v656_v44  ;;  %v3479_v12 = vadd.f32 %v3468_v7, %v662_v45  ;;  %v3482_v13 = vadd.f32 %v3470_v9, %v662_v45 }
  0xca   : > { %v659_v46 = vpop.xlane.xlu0 %658  ;;  %v665_v47 = vpop.xlane.xlu1 %664 }
  0xcb   : > { %v3485_v14 = vadd.f32 %v3468_v7, %v659_v46  ;;  %v3488_v16 = vadd.f32 %v3470_v9, %v659_v46  ;;  %v3491_v17 = vadd.f32 %v3468_v7, %v665_v47  ;;  %v3494_v18 = vadd.f32 %v3470_v9, %v665_v47 }
  0xce   : > { %v668_v48 = vpop.xlane.xlu0 %667  ;;  %v671_v49 = vpop.xlane.xlu1 %670 }
  0xcf   : > { %v3497_v19 = vadd.f32 %v3468_v7, %v668_v48  ;;  %v3500_v20 = vadd.f32 %v3470_v9, %v668_v48  ;;  %v3503_v21 = vadd.f32 %v3468_v7, %v671_v49  ;;  %v3506_v22 = vadd.f32 %v3470_v9, %v671_v49 }
  0xd2   : > { %v674_v5 = vpop.xlane.xlu0 %673  ;;  %v677_v50 = vpop.xlane.xlu1 %676 }
  0xd3   : > { %v3509_v23 = vadd.f32 %v3468_v7, %v674_v5  ;;  %v3512_v24 = vadd.f32 %v3470_v9, %v674_v5  ;;  %v3515_v25 = vadd.f32 %v3468_v7, %v677_v50  ;;  %v3518_v26 = vadd.f32 %v3470_v9, %v677_v50 }
  0xd6   : > { %v680_v51 = vpop.xlane.xlu0 %679  ;;  %v683_v52 = vpop.xlane.xlu1 %682 }
  0xd7   : > { %v3521_v27 = vadd.f32 %v3468_v7, %v680_v51  ;;  %v3524_v29 = vadd.f32 %v3470_v9, %v680_v51  ;;  %v3527_v30 = vadd.f32 %v3468_v7, %v683_v52  ;;  %v3530_v31 = vadd.f32 %v3470_v9, %v683_v52 }
  0xda   : > { %v686_v53 = vpop.xlane.xlu0 %685  ;;  %v689_v56 = vpop.xlane.xlu1 %688 }
  0xdb   : > { %v3533_v32 = vadd.f32 %v3468_v7, %v686_v53  ;;  %v3536_v34 = vadd.f32 %v3470_v9, %v686_v53  ;;  %v3539_v35 = vadd.f32 %v3468_v7, %v689_v56  ;;  %v3542_v36 = vadd.f32 %v3470_v9, %v689_v56 }
  0xde   : > { %v692_v59 = vpop.xlane.xlu0 %691  ;;  %v695_v61 = vpop.xlane.xlu1 %694 }
  0xdf   : > { %v3545_v37 = vadd.f32 %v3468_v7, %v692_v59  ;;  %v3548_v38 = vadd.f32 %v3470_v9, %v692_v59  ;;  %v3551_v40 = vadd.f32 %v3468_v7, %v695_v61  ;;  %v3554_v41 = vadd.f32 %v3470_v9, %v695_v61 }
  0xe2   : > { %v698_v63 = vpop.xlane.xlu0 %697  ;;  %v701_v2 = vpop.xlane.xlu1 %700 }
  0xe3   : > { %v3557_v42 = vadd.f32 %v3468_v7, %v698_v63  ;;  %v3560_v44 = vadd.f32 %v3470_v9, %v698_v63  ;;  %v3563_v45 = vadd.f32 %v3468_v7, %v701_v2  ;;  %v3566_v46 = vadd.f32 %v3470_v9, %v701_v2 }
  0xe5   : > { %4727 = vst [vmem:[#allocation11_spill] sm:$0xff] %v3557_v42  ;;  %4728 = vst [vmem:[#allocation12_spill] sm:$0xff] %v3560_v44 }
  0xe6   : > { %v704_v6 = vpop.xlane.xlu0 %703  ;;  %v707_v8 = vpop.xlane.xlu1 %706  ;;  %4729 = vst [vmem:[#allocation13_spill] sm:$0xff] %v3563_v45  ;;  %4730 = vst [vmem:[#allocation14_spill] sm:$0xff] %v3566_v46 }
  0xe7   : > { %v3569_v47 = vadd.f32 %v3468_v7, %v704_v6  ;;  %v3572_v49 = vadd.f32 %v3470_v9, %v704_v6  ;;  %v3575_v5 = vadd.f32 %v3468_v7, %v707_v8  ;;  %v3578_v50 = vadd.f32 %v3470_v9, %v707_v8 }
  0xea   : > { %v710_v10 = vpop.xlane.xlu0 %709  ;;  %v713_v43 = vpop.xlane.xlu1 %712 }
  0xeb   : > { %v3581_v51 = vadd.f32 %v3468_v7, %v710_v10  ;;  %v3584_v55 = vadd.f32 %v3470_v9, %v710_v10  ;;  %v3587_v56 = vadd.f32 %v3468_v7, %v713_v43  ;;  %v3590_v57 = vadd.f32 %v3470_v9, %v713_v43 }
  0xee   : > { %v716_v15 = vpop.xlane.xlu0 %715  ;;  %v719_v28 = vpop.xlane.xlu1 %718 }
  0xef   : > { %v3593_v58 = vadd.f32 %v3468_v7, %v716_v15  ;;  %v3596_v63 = vadd.f32 %v3470_v9, %v716_v15  ;;  %v3599_v0 = vadd.f32 %v3468_v7, %v719_v28  ;;  %v3602_v3 = vadd.f32 %v3470_v9, %v719_v28 }
  0xf2   : > { %v722_v33 = vpop.xlane.xlu0 %721  ;;  %v725_v48 = vpop.xlane.xlu1 %724 }
  0xf3   : > { %v3605_v4 = vadd.f32 %v3468_v7, %v722_v33  ;;  %v3610_v43 = vadd.f32 %v3470_v9, %v722_v33  ;;  %v3613_v15 = vadd.f32 %v3468_v7, %v725_v48  ;;  %v3618_v46 = vadd.f32 %v3470_v9, %v725_v48 }
  0xf5   : > { %4731 = vst [vmem:[#allocation15_spill] sm:$0xff] %v3613_v15  ;;  %4732 = vst [vmem:[#allocation16_spill] sm:$0xff] %v3618_v46 }
  0xf6   : > { %v728_v52 = vpop.xlane.xlu0 %727  ;;  %v731_v6 = vpop.xlane.xlu1 %730 }
  0xf7   : > { %v3626_v15 = vadd.f32 %v3470_v9, %v728_v52 }
  0xf9   : > { %4734 = vst [vmem:[#allocation18_spill] sm:$0xff] %v3626_v15 }
  0xfa   : > { %v737_v48 = vpop.xlane.xlu1 %736 }
 0x10a   : > { %v431_v53 = vpop.f32.mrb[0].mxu0  ;;  %v527_v54 = vpop.f32.mrb[0].mxu1 }
 0x10b   : > { %v832_v59 = vmul.f32 2.0, %v431_v53  ;;  %v433_v60 = vpop.f32.mrb[1].mxu0  ;;  %v864_v61 = vmul.f32 2.0, %v527_v54  ;;  %v529_v62 = vpop.f32.mrb[1].mxu1 }
 0x10c   : > { %v833_v1 = vmul.f32 2.0, %v433_v60  ;;  %v865_v2 = vmul.f32 2.0, %v529_v62  ;;  %v734_v53 = vpop.xlane.xlu0 %733 }
 0x10d   : > { %v896_v8 = vsub.f32 %v3473_v39, %v832_v59  ;;  %v928_v10 = vsub.f32 %v3569_v47, %v864_v61  ;;  %v3621_v39 = vadd.f32 %v3468_v7, %v728_v52 }
 0x10e   : > { %v897_v54 = vsub.f32 %v3476_v11, %v833_v1  ;;  %v437_v60 = vpop.f32.mrb[2].mxu0  ;;  %v929_v28 = vsub.f32 %v3572_v49, %v865_v2  ;;  %v533_v62 = vpop.f32.mrb[2].mxu1  ;;  %v3631_v49 = vadd.f32 %v3468_v7, %v731_v6 }
 0x10f   : > { %4733 = vst [vmem:[#allocation17_spill] sm:$0xff] %v3621_v39  ;;  %v960_v47 = vmax.f32 %v896_v8, 0.0  ;;  %v834_v59 = vmul.f32 2.0, %v437_v60  ;;  %v439_v33 = vpop.f32.mrb[3].mxu0  ;;  %v3623_v61 = vmul.f32 2.0, %v533_v62  ;;  %v535_v45 = vpop.f32.mrb[3].mxu1  ;;  %v3637_v60 = vadd.f32 %v3470_v9, %v731_v6 }
 0x110   : > { %v961_v11 = vmax.f32 %v897_v54, 0.0  ;;  %v835_v1 = vmul.f32 2.0, %v439_v33  ;;  %v3628_v44 = vmul.f32 2.0, %v535_v45  ;;  %4735 = vst [vmem:[#allocation19_spill] sm:$0xff] %v3631_v49  ;;  %v740_v62 = vpop.xlane.xlu0 %739  ;;  %v3643_v49 = vadd.f32 %v3468_v7, %v734_v53 }
 0x111   : > { %v1024_v2 = vadd.f32 1.0, %v960_v47  ;;  %v898_v39 = vsub.f32 %v3485_v14, %v834_v59  ;;  %v930_v8 = vsub.f32 %v3575_v5, %v3623_v61  ;;  %4736 = vst [vmem:[#allocation20_spill] sm:$0xff] %v3637_v60  ;;  %v3646_v5 = vadd.f32 %v3470_v9, %v734_v53 }
 0x112   : > { %v1025_v52 = vadd.f32 1.0, %v961_v11  ;;  %v899_v54 = vsub.f32 %v3488_v16, %v835_v1  ;;  %v443_v33 = vpop.f32.mrb[4].mxu0  ;;  %v931_v45 = vsub.f32 %v3578_v50, %v3628_v44  ;;  %v539_v15 = vpop.f32.mrb[4].mxu1  ;;  %4737 = vst [vmem:[#allocation21_spill] sm:$0xff] %v3643_v49  ;;  %v3649_v6 = vadd.f32 %v3468_v7, %v737_v48 }
 0x113   : > { %v962_v47 = vmax.f32 %v898_v39, 0.0  ;;  %v836_v14 = vmul.f32 2.0, %v443_v33  ;;  %v445_v59 = vpop.f32.mrb[5].mxu0  ;;  %v541_v46 = vpop.f32.mrb[5].mxu1  ;;  %4738 = vst [vmem:[#allocation22_spill] sm:$0xff] %v3646_v5  ;;  %v3652_v11 = vadd.f32 %v3470_v9, %v737_v48  ;;  %v3655_v44 = vadd.f32 %v3468_v7, %v740_v62 }
 0x114   : > { %4739 = vst [vmem:[#allocation23_spill] sm:$0xff] %v3649_v6  ;;  %v963_v61 = vmax.f32 %v899_v54, 0.0  ;;  %v837_v16 = vmul.f32 2.0, %v445_v59  ;;  %2779 = vrcp.f32 %v1024_v2  ;;  %v992_v1 = vmax.f32 %v928_v10, 0.0  ;;  %v3658_v33 = vpop.xlane.xlu1 %742 }
 0x115   : > { %4740 = vst [vmem:[#allocation24_spill] sm:$0xff] %v3652_v11  ;;  %4741 = vst [vmem:[#allocation25_spill] sm:$0xff] %v3655_v44  ;;  %v1026_v50 = vadd.f32 1.0, %v962_v47  ;;  %v900_v39 = vsub.f32 %v3479_v12, %v836_v14  ;;  %2781 = vrcp.f32 %v1025_v52  ;;  %v993_v54 = vmax.f32 %v929_v28, 0.0 }
 0x116   : > { %v1027_v53 = vadd.f32 1.0, %v963_v61  ;;  %v901_v5 = vsub.f32 %v3482_v13, %v837_v16  ;;  %v449_v6 = vpop.f32.mrb[6].mxu0  ;;  %v545_v59 = vpop.f32.mrb[6].mxu1  ;;  %v3661_v60 = vmul.f32 2.0, %v539_v15  ;;  %v3663_v10 = vmul.f32 2.0, %v541_v46 }
 0x117   : > { %2783 = vrcp.f32 %v1026_v50  ;;  %v964_v48 = vmax.f32 %v900_v39, 0.0  ;;  %v838_v11 = vmul.f32 2.0, %v449_v6  ;;  %v451_v49 = vpop.f32.mrb[7].mxu0  ;;  %v547_v2 = vpop.f32.mrb[7].mxu1  ;;  %v3669_v28 = vadd.f32 %v3470_v9, %v740_v62 }
 0x118   : > { %2785 = vrcp.f32 %v1027_v53  ;;  %v965_v47 = vmax.f32 %v901_v5, 0.0  ;;  %v839_v12 = vmul.f32 2.0, %v451_v49  ;;  %v3676_v46 = vadd.f32 %v3468_v7, %v3658_v33 }
 0x119   : > { %v1028_v14 = vadd.f32 1.0, %v964_v48  ;;  %v902_v52 = vsub.f32 %v3491_v17, %v838_v11  ;;  %4742 = vst [vmem:[#allocation26_spill] sm:$0xff] %v3669_v28  ;;  %v1056_v50 = vadd.f32 1.0, %v992_v1  ;;  %v3681_v16 = vmul.f32 2.0, %v545_v59 }
 0x11a   : > { %v1029_v61 = vadd.f32 1.0, %v965_v47  ;;  %v903_v6 = vsub.f32 %v3494_v18, %v839_v12  ;;  %v455_v15 = vpop.f32.mrb[8].mxu0  ;;  %v551_v5 = vpop.f32.mrb[8].mxu1  ;;  %4743 = vst [vmem:[#allocation27_spill] sm:$0xff] %v3676_v46  ;;  %v1057_v18 = vadd.f32 1.0, %v993_v54  ;;  %v994_v12 = vmax.f32 %v930_v8, 0.0 }
 0x11b   : > { %2787 = vrcp.f32 %v1028_v14  ;;  %v966_v17 = vmax.f32 %v902_v52, 0.0  ;;  %v840_v49 = vmul.f32 2.0, %v455_v15  ;;  %v457_v11 = vpop.f32.mrb[9].mxu0  ;;  %v3678_v39 = vpop.f32.mrb[9].mxu1  ;;  %v995_v52 = vmax.f32 %v931_v45, 0.0 }
 0x11c   : > { %2789 = vrcp.f32 %v1029_v61  ;;  %v967_v62 = vmax.f32 %v903_v6, 0.0  ;;  %v841_v53 = vmul.f32 2.0, %v457_v11  ;;  %v3684_v15 = vmul.f32 2.0, %v547_v2 }
 0x11d   : > { %v1030_v48 = vadd.f32 1.0, %v966_v17  ;;  %v904_v47 = vsub.f32 %v3497_v19, %v840_v49 }
 0x11e   : > { %v1031_v13 = vadd.f32 1.0, %v967_v62  ;;  %v905_v46 = vsub.f32 %v3500_v20, %v841_v53  ;;  %v461_v14 = vpop.f32.mrb[10].mxu0  ;;  %v3686_v1 = vpop.f32.mrb[10].mxu1  ;;  %v1058_v62 = vadd.f32 1.0, %v994_v12 }
 0x11f   : > { %v2780_v28 = vpop.eup %2779  ;;  %2791 = vrcp.f32 %v1030_v48  ;;  %v968_v61 = vmax.f32 %v904_v47, 0.0  ;;  %v842_v6 = vmul.f32 2.0, %v461_v14  ;;  %v463_v54 = vpop.f32.mrb[11].mxu0 }
 0x120   : > { %v3690_v8 = vpop.f32.mrb[11].mxu1  ;;  %v2782_v59 = vpop.eup %2781  ;;  %2793 = vrcp.f32 %v1031_v13  ;;  %v969_v17 = vmax.f32 %v905_v46, 0.0  ;;  %v843_v20 = vmul.f32 2.0, %v463_v54 }
 0x121   : > { %v2784_v2 = vpop.eup %2783  ;;  %v1032_v49 = vadd.f32 1.0, %v968_v61  ;;  %v906_v11 = vsub.f32 %v3503_v21, %v842_v6  ;;  %2795 = vrcp.f32 %v1056_v50  ;;  %v1059_v61 = vadd.f32 1.0, %v995_v52 }
 0x122   : > { %v2786_v53 = vpop.eup %2785  ;;  %v1153_v48 = vadd.f32 %v2784_v2, %v2780_v28  ;;  %v1033_v47 = vadd.f32 1.0, %v969_v17  ;;  %v907_v14 = vsub.f32 %v3506_v22, %v843_v20  ;;  %v467_v19 = vpop.f32.mrb[12].mxu0  ;;  %2797 = vrcp.f32 %v1057_v18 }
 0x123   : > { %v3696_v44 = vpop.f32.mrb[12].mxu1  ;;  %v1190_v13 = vadd.f32 %v2786_v53, %v2782_v59  ;;  %2799 = vrcp.f32 %v1032_v49  ;;  %v970_v46 = vmax.f32 %v906_v11, 0.0  ;;  %v844_v54 = vmul.f32 2.0, %v467_v19  ;;  %v469_v45 = vpop.f32.mrb[13].mxu0 }
 0x124   : > { %v3698_v42 = vpop.f32.mrb[13].mxu1  ;;  %2801 = vrcp.f32 %v1033_v47  ;;  %v971_v21 = vmax.f32 %v907_v14, 0.0  ;;  %v845_v50 = vmul.f32 2.0, %v469_v45  ;;  %v3702_v28 = vadd.f32 %v3470_v9, %v3658_v33 }
 0x125   : > { %v2788_v12 = vpop.eup %2787  ;;  %v1034_v22 = vadd.f32 1.0, %v970_v46  ;;  %v908_v18 = vsub.f32 %v3509_v23, %v844_v54  ;;  %v3705_v6 = vmul.f32 2.0, %v551_v5  ;;  %2803 = vrcp.f32 %v1058_v62 }
 0x126   : > { %v2790_v59 = vpop.eup %2789  ;;  %v1154_v17 = vadd.f32 %v2788_v12, %v1153_v48  ;;  %v1035_v19 = vadd.f32 1.0, %v971_v21  ;;  %v909_v20 = vsub.f32 %v3512_v24, %v845_v50  ;;  %v473_v2 = vpop.f32.mrb[14].mxu0  ;;  %v3713_v52 = vmul.f32 2.0, %v3678_v39 }
 0x127   : > { %v3708_v49 = vpop.f32.mrb[14].mxu1  ;;  %v1191_v45 = vadd.f32 %v2790_v59, %v1190_v13  ;;  %2805 = vrcp.f32 %v1034_v22  ;;  %v972_v33 = vmax.f32 %v908_v18, 0.0  ;;  %v846_v11 = vmul.f32 2.0, %v473_v2  ;;  %v475_v53 = vpop.f32.mrb[15].mxu0 }
 0x128   : > { %v3710_v47 = vpop.f32.mrb[15].mxu1  ;;  %2807 = vrcp.f32 %v1035_v19  ;;  %v973_v23 = vmax.f32 %v909_v20, 0.0  ;;  %v847_v5 = vmul.f32 2.0, %v475_v53  ;;  %v4744_v62 = vsub.f32 %v3581_v51, %v3661_v60 }
 0x129   : > { %v2792_v48 = vpop.eup %2791  ;;  %v1036_v14 = vadd.f32 1.0, %v972_v33  ;;  %v910_v24 = vsub.f32 %v3515_v25, %v846_v11  ;;  %v936_v46 = vsub.f32 %v3593_v58, %v3705_v6  ;;  %v4745_v39 = vsub.f32 %v3584_v55, %v3663_v10 }
 0x12a   : > { %v996_v13 = vmax.f32 %v4744_v62, 0.0  ;;  %v2794_v54 = vpop.eup %2793  ;;  %v1155_v21 = vadd.f32 %v2792_v48, %v1154_v17  ;;  %v1037_v50 = vadd.f32 1.0, %v973_v23  ;;  %v911_v12 = vsub.f32 %v3518_v26, %v847_v5  ;;  %v479_v22 = vpop.f32.mrb[16].mxu0 }
 0x12b   : > { %v997_v18 = vmax.f32 %v4745_v39, 0.0  ;;  %v3725_v59 = vpop.f32.mrb[16].mxu1  ;;  %v3727_v25 = vpop.eup %2795  ;;  %v1192_v19 = vadd.f32 %v2794_v54, %v1191_v45  ;;  %2809 = vrcp.f32 %v1036_v14  ;;  %v974_v51 = vmax.f32 %v910_v24, 0.0 }
 0x12c   : > { %v848_v60 = vmul.f32 2.0, %v479_v22  ;;  %v481_v20 = vpop.f32.mrb[17].mxu0  ;;  %v3729_v2 = vpop.f32.mrb[17].mxu1  ;;  %2811 = vrcp.f32 %v1037_v50  ;;  %v975_v26 = vmax.f32 %v911_v12, 0.0  ;;  %v937_v55 = vsub.f32 %v3596_v63, %v3713_v52 }
 0x12d   : > { %v3731_v17 = vpop.eup %2797  ;;  %v849_v33 = vmul.f32 2.0, %v481_v20  ;;  %v1038_v11 = vadd.f32 1.0, %v974_v51  ;;  %2813 = vrcp.f32 %v1059_v61  ;;  %v1060_v45 = vadd.f32 1.0, %v996_v13 }
 0x12e   : > { %v2800_v10 = vpop.eup %2799  ;;  %v912_v53 = vsub.f32 %v3521_v27, %v848_v60  ;;  %v1039_v48 = vadd.f32 1.0, %v975_v26  ;;  %v485_v24 = vpop.f32.mrb[18].mxu0  ;;  %v1061_v62 = vadd.f32 1.0, %v997_v18  ;;  %v3744_v13 = vmul.f32 2.0, %v3686_v1 }
 0x12f   : > { %v2802_v23 = vpop.eup %2801  ;;  %v1156_v5 = vadd.f32 %v2800_v10, %v1155_v21  ;;  %v913_v14 = vsub.f32 %v3524_v29, %v849_v33  ;;  %v3737_v54 = vpop.f32.mrb[18].mxu1  ;;  %2815 = vrcp.f32 %v1038_v11  ;;  %v850_v22 = vmul.f32 2.0, %v485_v24 }
 0x130   : > { %v1193_v50 = vadd.f32 %v2802_v23, %v1192_v19  ;;  %v976_v12 = vmax.f32 %v912_v53, 0.0  ;;  %v487_v39 = vpop.f32.mrb[19].mxu0  ;;  %v3739_v20 = vpop.f32.mrb[19].mxu1  ;;  %2817 = vrcp.f32 %v1039_v48  ;;  %v3748_v19 = vmul.f32 2.0, %v3690_v8 }
 0x131   : > { %v3741_v51 = vpop.eup %2803  ;;  %v977_v27 = vmax.f32 %v913_v14, 0.0  ;;  %v851_v61 = vmul.f32 2.0, %v487_v39  ;;  %v914_v18 = vsub.f32 %v3527_v30, %v850_v22  ;;  %2819 = vrcp.f32 %v1060_v45 }
 0x132   : > { %v2806_v29 = vpop.eup %2805  ;;  %v1040_v21 = vadd.f32 1.0, %v976_v12  ;;  %v491_v11 = vpop.f32.mrb[20].mxu0  ;;  %v4746_v53 = vsub.f32 %v3587_v56, %v3681_v16  ;;  %v939_v16 = vsub.f32 %v3602_v3, %v3748_v19  ;;  %v881_v3 = vmul.f32 2.0, %v3729_v2 }
 0x133   : > { %v2808_v60 = vpop.eup %2807  ;;  %v1157_v26 = vadd.f32 %v2806_v29, %v1156_v5  ;;  %v1041_v33 = vadd.f32 1.0, %v977_v27  ;;  %v915_v10 = vsub.f32 %v3530_v31, %v851_v61  ;;  %v3754_v1 = vpop.f32.mrb[20].mxu1  ;;  %v978_v14 = vmax.f32 %v914_v18, 0.0 }
 0x134   : > { %v998_v23 = vmax.f32 %v4746_v53, 0.0  ;;  %v1194_v48 = vadd.f32 %v2808_v60, %v1193_v50  ;;  %2821 = vrcp.f32 %v1040_v21  ;;  %v852_v30 = vmul.f32 2.0, %v491_v11  ;;  %v493_v45 = vpop.f32.mrb[21].mxu0  ;;  %v3756_v24 = vpop.f32.mrb[21].mxu1 }
 0x135   : > { %2823 = vrcp.f32 %v1041_v33  ;;  %v979_v8 = vmax.f32 %v915_v10, 0.0  ;;  %v853_v5 = vmul.f32 2.0, %v493_v45  ;;  %v938_v31 = vsub.f32 %v3599_v0, %v3744_v13  ;;  %v2810_v12 = vpop.eup %2809  ;;  %v3763_v50 = vpop.xlane.xlu0 %745  ;;  %v4751_v0 = vld [vmem:[#allocation16_spill] sm:$0xff] }
 0x136   : > { %v1042_v22 = vadd.f32 1.0, %v978_v14  ;;  %2825 = vrcp.f32 %v1061_v62  ;;  %v916_v56 = vsub.f32 %v3533_v32, %v852_v30  ;;  %v2812_v39 = vpop.eup %2811  ;;  %v1158_v27 = vadd.f32 %v2810_v12, %v1157_v26  ;;  %v497_v60 = vpop.f32.mrb[22].mxu0 }
 0x137   : > { %v1043_v61 = vadd.f32 1.0, %v979_v8  ;;  %v917_v29 = vsub.f32 %v3536_v34, %v853_v5  ;;  %v4747_v21 = vsub.f32 %v3590_v57, %v3684_v15  ;;  %v3769_v33 = vpop.f32.mrb[22].mxu1  ;;  %v3771_v62 = vpop.eup %2813  ;;  %v1195_v32 = vadd.f32 %v2812_v39, %v1194_v48 }
 0x138   : > { %2827 = vrcp.f32 %v1042_v22  ;;  %v980_v10 = vmax.f32 %v916_v56, 0.0  ;;  %v854_v11 = vmul.f32 2.0, %v497_v60  ;;  %v499_v53 = vpop.f32.mrb[23].mxu0  ;;  %v3773_v14 = vpop.f32.mrb[23].mxu1  ;;  %v3777_v34 = vadd.f32 %v3468_v7, %v3763_v50 }
 0x139   : > { %v999_v18 = vmax.f32 %v4747_v21, 0.0  ;;  %2829 = vrcp.f32 %v1043_v61  ;;  %v981_v26 = vmax.f32 %v917_v29, 0.0  ;;  %v855_v30 = vmul.f32 2.0, %v499_v53  ;;  %v2816_v57 = vpop.eup %2815 }
 0x13a   : > { %v1044_v15 = vadd.f32 1.0, %v980_v10  ;;  %v1062_v45 = vadd.f32 1.0, %v998_v23  ;;  %v918_v8 = vsub.f32 %v3539_v35, %v854_v11  ;;  %v3781_v48 = vmul.f32 2.0, %v3696_v44  ;;  %v2818_v5 = vpop.eup %2817  ;;  %v503_v61 = vpop.f32.mrb[24].mxu0 }
 0x13b   : > { %v1159_v12 = vadd.f32 %v2816_v57, %v1158_v27  ;;  %v1045_v22 = vadd.f32 1.0, %v981_v26  ;;  %v1063_v56 = vadd.f32 1.0, %v999_v18  ;;  %v919_v39 = vsub.f32 %v3542_v36, %v855_v30  ;;  %v3784_v29 = vpop.f32.mrb[24].mxu1  ;;  %v3786_v21 = vpop.eup %2819 }
 0x13c   : > { %v1196_v60 = vadd.f32 %v2818_v5, %v1195_v32  ;;  %2831 = vrcp.f32 %v1044_v15  ;;  %v982_v10 = vmax.f32 %v918_v8, 0.0  ;;  %v856_v23 = vmul.f32 2.0, %v503_v61  ;;  %v505_v53 = vpop.f32.mrb[25].mxu0  ;;  %v3788_v35 = vpop.f32.mrb[25].mxu1 }
 0x13d   : > { %2833 = vrcp.f32 %v1045_v22  ;;  %v983_v44 = vmax.f32 %v919_v39, 0.0  ;;  %v857_v11 = vmul.f32 2.0, %v505_v53  ;;  %v3791_v27 = vmul.f32 2.0, %v3698_v42 }
 0x13e   : > { %v2822_v18 = vpop.eup %2821  ;;  %v1046_v36 = vadd.f32 1.0, %v982_v10  ;;  %v1000_v26 = vmax.f32 %v936_v46, 0.0  ;;  %v920_v32 = vsub.f32 %v3545_v37, %v856_v23  ;;  %v940_v30 = vsub.f32 %v3605_v4, %v3781_v48  ;;  %v509_v22 = vpop.f32.mrb[26].mxu0  ;;  %v4755_v4 = vld [vmem:[#allocation18_spill] sm:$0xff] }
 0x13f   : > { %v2824_v57 = vpop.eup %2823  ;;  %v1160_v15 = vadd.f32 %v2822_v18, %v1159_v12  ;;  %v1047_v8 = vadd.f32 1.0, %v983_v44  ;;  %v1001_v5 = vmax.f32 %v937_v55, 0.0  ;;  %v921_v42 = vsub.f32 %v3548_v38, %v857_v11  ;;  %v3803_v39 = vpop.f32.mrb[26].mxu1 }
 0x140   : > { %v3805_v61 = vpop.eup %2825  ;;  %v1197_v58 = vadd.f32 %v2824_v57, %v1196_v60  ;;  %2835 = vrcp.f32 %v1046_v36  ;;  %v984_v37 = vmax.f32 %v920_v32, 0.0  ;;  %v858_v6 = vmul.f32 2.0, %v509_v22  ;;  %v511_v46 = vpop.f32.mrb[27].mxu0 }
 0x141   : > { %v3807_v10 = vpop.f32.mrb[27].mxu1  ;;  %2837 = vrcp.f32 %v1047_v8  ;;  %v985_v12 = vmax.f32 %v921_v42, 0.0  ;;  %v859_v23 = vmul.f32 2.0, %v511_v46  ;;  %v941_v63 = vsub.f32 %v3610_v43, %v3791_v27 }
 0x142   : > { %v2828_v52 = vpop.eup %2827  ;;  %2839 = vrcp.f32 %v1062_v45  ;;  %v1064_v38 = vadd.f32 1.0, %v1000_v26  ;;  %v1048_v55 = vadd.f32 1.0, %v984_v37  ;;  %v922_v53 = vsub.f32 %v3551_v40, %v858_v6  ;;  %v515_v36 = vpop.f32.mrb[28].mxu0 }
 0x143   : > { %v2830_v44 = vpop.eup %2829  ;;  %v1161_v60 = vadd.f32 %v2828_v52, %v1160_v15  ;;  %2841 = vrcp.f32 %v1063_v56  ;;  %v1049_v11 = vadd.f32 1.0, %v985_v12  ;;  %v923_v18 = vsub.f32 %v3554_v41, %v859_v23  ;;  %v3813_v32 = vpop.f32.mrb[28].mxu1  ;;  %v4748_v23 = vld [vmem:[#allocation11_spill] sm:$0xff] }
 0x144   : > { %v1198_v57 = vadd.f32 %v2830_v44, %v1197_v58  ;;  %2843 = vrcp.f32 %v1048_v55  ;;  %v986_v8 = vmax.f32 %v922_v53, 0.0  ;;  %v517_v42 = vpop.f32.mrb[29].mxu0  ;;  %v3816_v22 = vmul.f32 2.0, %v3708_v49  ;;  %v3818_v45 = vpop.f32.mrb[29].mxu1 }
 0x145   : > { %v1065_v26 = vadd.f32 1.0, %v1001_v5  ;;  %2845 = vrcp.f32 %v1049_v11  ;;  %v987_v40 = vmax.f32 %v923_v18, 0.0  ;;  %v860_v15 = vmul.f32 2.0, %v515_v36  ;;  %v4750_v11 = vld [vmem:[#allocation15_spill] sm:$0xff] }
 0x146   : > { %v2832_v56 = vpop.eup %2831  ;;  %2847 = vrcp.f32 %v1064_v38  ;;  %v1050_v37 = vadd.f32 1.0, %v986_v8  ;;  %v861_v41 = vmul.f32 2.0, %v517_v42  ;;  %v3821_v6 = vmul.f32 2.0, %v3710_v47  ;;  %v521_v5 = vpop.f32.mrb[30].mxu0  ;;  %v4749_v38 = vld [vmem:[#allocation12_spill] sm:$0xff] }
 0x147   : > { %v2834_v58 = vpop.eup %2833  ;;  %v1162_v46 = vadd.f32 %v2832_v56, %v1161_v60  ;;  %v1002_v49 = vmax.f32 %v938_v31, 0.0  ;;  %v1051_v12 = vadd.f32 1.0, %v987_v40  ;;  %v924_v52 = vsub.f32 %v4748_v23, %v860_v15  ;;  %v3827_v55 = vpop.f32.mrb[30].mxu1 }
 0x148   : > { %v1199_v53 = vadd.f32 %v2834_v58, %v1198_v57  ;;  %2849 = vrcp.f32 %v1050_v37  ;;  %v925_v44 = vsub.f32 %v4749_v38, %v861_v41  ;;  %v942_v47 = vsub.f32 %v4750_v11, %v3816_v22  ;;  %v523_v18 = vpop.f32.mrb[31].mxu0  ;;  %v3832_v36 = vpop.f32.mrb[31].mxu1  ;;  %v4752_v41 = vld [vmem:[#allocation13_spill] sm:$0xff] }
 0x149   : > { %2851 = vrcp.f32 %v1051_v12  ;;  %v988_v60 = vmax.f32 %v924_v52, 0.0  ;;  %v943_v13 = vsub.f32 %v4751_v0, %v3821_v6  ;;  %v862_v31 = vmul.f32 2.0, %v521_v5  ;;  %v4753_v5 = vld [vmem:[#allocation14_spill] sm:$0xff] }
 0x14a   : > { %v2836_v8 = vpop.eup %2835  ;;  %2853 = vrcp.f32 %v1065_v26  ;;  %v989_v42 = vmax.f32 %v925_v44, 0.0  ;;  %v863_v40 = vmul.f32 2.0, %v523_v18  ;;  %v880_v57 = vmul.f32 2.0, %v3725_v59  ;;  %v4754_v44 = vld [vmem:[#allocation17_spill] sm:$0xff] }
 0x14b   : > { %v2838_v15 = vpop.eup %2837  ;;  %v1163_v56 = vadd.f32 %v2836_v8, %v1162_v46  ;;  %v1003_v22 = vmax.f32 %v939_v16, 0.0  ;;  %v1052_v37 = vadd.f32 1.0, %v988_v60  ;;  %v926_v58 = vsub.f32 %v4752_v41, %v862_v31 }
 0x14c   : > { %v3841_v12 = vpop.eup %2839  ;;  %v1200_v23 = vadd.f32 %v2838_v15, %v1199_v53  ;;  %v1066_v6 = vadd.f32 1.0, %v1002_v49  ;;  %v1053_v52 = vadd.f32 1.0, %v989_v42  ;;  %v927_v26 = vsub.f32 %v4753_v5, %v863_v40 }
 0x14d   : > { %v3844_v38 = vpop.eup %2841  ;;  %v1004_v59 = vmax.f32 %v940_v30, 0.0  ;;  %2855 = vrcp.f32 %v1052_v37  ;;  %v990_v46 = vmax.f32 %v926_v58, 0.0  ;;  %v944_v11 = vsub.f32 %v4754_v44, %v880_v57 }
 0x14e   : > { %v2844_v19 = vpop.eup %2843  ;;  %2857 = vrcp.f32 %v1053_v52  ;;  %v991_v16 = vmax.f32 %v927_v26, 0.0  ;;  %v882_v49 = vmul.f32 2.0, %v3737_v54  ;;  %v1005_v60 = vmax.f32 %v941_v63, 0.0  ;;  %v4756_v54 = vld [vmem:[#allocation19_spill] sm:$0xff]  ;;  %v4759_v26 = vld [vmem:[#allocation22_spill] sm:$0xff] }
 0x14f   : > { %v2846_v53 = vpop.eup %2845  ;;  %v1164_v18 = vadd.f32 %v2844_v19, %v1163_v56  ;;  %v1054_v0 = vadd.f32 1.0, %v990_v46  ;;  %v945_v48 = vsub.f32 %v4755_v4, %v881_v3  ;;  %v1067_v2 = vadd.f32 1.0, %v1003_v22  ;;  %v4757_v22 = vld [vmem:[#allocation20_spill] sm:$0xff] }
 0x150   : > { %v3856_v30 = vpop.eup %2847  ;;  %v1201_v31 = vadd.f32 %v2846_v53, %v1200_v23  ;;  %2859 = vrcp.f32 %v1066_v6  ;;  %v1055_v8 = vadd.f32 1.0, %v991_v16  ;;  %v1006_v42 = vmax.f32 %v942_v47, 0.0 }
 0x151   : > { %2861 = vrcp.f32 %v1054_v0  ;;  %v883_v40 = vmul.f32 2.0, %v3739_v20  ;;  %v946_v57 = vsub.f32 %v4756_v54, %v882_v49  ;;  %v1068_v56 = vadd.f32 1.0, %v1004_v59  ;;  %v4758_v20 = vld [vmem:[#allocation21_spill] sm:$0xff]  ;;  %v4760_v49 = vld [vmem:[#allocation23_spill] sm:$0xff]  ;;  %v4763_v54 = vld [vmem:[#allocation26_spill] sm:$0xff] }
 0x152   : > { %v2850_v15 = vpop.eup %2849  ;;  %2863 = vrcp.f32 %v1055_v8  ;;  %v884_v43 = vmul.f32 2.0, %v3754_v1  ;;  %v885_v27 = vmul.f32 2.0, %v3756_v24  ;;  %v1069_v41 = vadd.f32 1.0, %v1005_v60  ;;  %v4762_v8 = vld [vmem:[#allocation25_spill] sm:$0xff] }
 0x153   : > { %v2852_v63 = vpop.eup %2851  ;;  %v1165_v37 = vadd.f32 %v2850_v15, %v1164_v18  ;;  %v1007_v58 = vmax.f32 %v943_v13, 0.0  ;;  %v947_v23 = vsub.f32 %v4757_v22, %v883_v40  ;;  %v1008_v52 = vmax.f32 %v944_v11, 0.0  ;;  %v4764_v22 = vld [vmem:[#allocation27_spill] sm:$0xff] }
 0x154   : > { %v3863_v6 = vpop.eup %2853  ;;  %v1202_v47 = vadd.f32 %v2852_v63, %v1201_v31  ;;  %v948_v5 = vsub.f32 %v4758_v20, %v884_v43  ;;  %v949_v46 = vsub.f32 %v4759_v26, %v885_v27  ;;  %2865 = vrcp.f32 %v1067_v2 }
 0x155   : > { %v1070_v59 = vadd.f32 1.0, %v1006_v42  ;;  %v1009_v3 = vmax.f32 %v945_v48, 0.0  ;;  %v886_v1 = vmul.f32 2.0, %v3769_v33  ;;  %2867 = vrcp.f32 %v1068_v56  ;;  %v4761_v48 = vld [vmem:[#allocation24_spill] sm:$0xff] }
 0x156   : > { %v1010_v24 = vmax.f32 %v946_v57, 0.0  ;;  %v887_v19 = vmul.f32 2.0, %v3773_v14  ;;  %v888_v13 = vmul.f32 2.0, %v3784_v29  ;;  %2869 = vrcp.f32 %v1069_v41 }
 0x157   : > { %v2856_v16 = vpop.eup %2855  ;;  %v1071_v44 = vadd.f32 1.0, %v1007_v58  ;;  %v950_v11 = vsub.f32 %v4760_v49, %v886_v1  ;;  %v889_v53 = vmul.f32 2.0, %v3788_v35  ;;  %v1072_v0 = vadd.f32 1.0, %v1008_v52  ;;  %v749_v35 = vpop.xlane.xlu1 %748 }
 0x158   : > { %v2858_v18 = vpop.eup %2857  ;;  %v1166_v60 = vadd.f32 %v2856_v16, %v1165_v37  ;;  %v1011_v4 = vmax.f32 %v947_v23, 0.0  ;;  %v951_v31 = vsub.f32 %v4761_v48, %v887_v19  ;;  %2871 = vrcp.f32 %v1070_v59 }
 0x159   : > { %v1203_v33 = vadd.f32 %v2858_v18, %v1202_v47  ;;  %v1073_v2 = vadd.f32 1.0, %v1009_v3  ;;  %v952_v14 = vsub.f32 %v4762_v8, %v888_v13  ;;  %v1074_v29 = vadd.f32 1.0, %v1010_v24 }
 0x15a   : > { %v3874_v42 = vpop.eup %2859  ;;  %v1012_v40 = vmax.f32 %v948_v5, 0.0  ;;  %v953_v57 = vsub.f32 %v4763_v54, %v889_v53  ;;  %v890_v15 = vmul.f32 2.0, %v3803_v39  ;;  %2873 = vrcp.f32 %v1071_v44 }
 0x15b   : > { %v2862_v56 = vpop.eup %2861  ;;  %v1013_v43 = vmax.f32 %v949_v46, 0.0  ;;  %v891_v27 = vmul.f32 2.0, %v3807_v10  ;;  %v829_v63 = vadd.f32 %v3470_v9, %v3763_v50  ;;  %2875 = vrcp.f32 %v1072_v0 }
 0x15c   : > { %v2864_v37 = vpop.eup %2863  ;;  %v1167_v41 = vadd.f32 %v2862_v56, %v1166_v60  ;;  %v1075_v58 = vadd.f32 1.0, %v1011_v4  ;;  %v954_v23 = vsub.f32 %v4764_v22, %v890_v15  ;;  %2877 = vrcp.f32 %v1073_v2 }
 0x15d   : > { %v1204_v47 = vadd.f32 %v2864_v37, %v1203_v33  ;;  %v955_v52 = vsub.f32 %v3702_v28, %v891_v27  ;;  %v830_v39 = vadd.f32 %v3468_v7, %v749_v35  ;;  %2879 = vrcp.f32 %v1074_v29 }
 0x15e   : > { %v1168_v20 = vadd.f32 %v3727_v25, %v1167_v41  ;;  %v1076_v5 = vadd.f32 1.0, %v1012_v40  ;;  %v831_v10 = vadd.f32 %v3470_v9, %v749_v35  ;;  %v2866_v26 = vpop.eup %2865  ;;  %v1077_v46 = vadd.f32 1.0, %v1013_v43 }
 0x15f   : > { %v1205_v50 = vadd.f32 %v3731_v17, %v1204_v47  ;;  %v1014_v59 = vmax.f32 %v950_v11, 0.0  ;;  %v892_v3 = vmul.f32 2.0, %v3813_v32  ;;  %v2868_v1 = vpop.eup %2867  ;;  %2881 = vrcp.f32 %v1075_v58 }
 0x160   : > { %v1169_v24 = vadd.f32 %v3741_v51, %v1168_v20  ;;  %v1015_v28 = vmax.f32 %v951_v31, 0.0  ;;  %v893_v7 = vmul.f32 2.0, %v3818_v45  ;;  %v2870_v19 = vpop.eup %2869  ;;  %v1016_v13 = vmax.f32 %v952_v14, 0.0 }
 0x161   : > { %v1206_v25 = vadd.f32 %v3771_v62, %v1205_v50  ;;  %v956_v9 = vsub.f32 %v3777_v34, %v892_v3  ;;  %v894_v16 = vmul.f32 2.0, %v3827_v55  ;;  %v1017_v44 = vmax.f32 %v953_v57, 0.0 }
 0x162   : > { %v1170_v17 = vadd.f32 %v3786_v21, %v1169_v24  ;;  %v957_v49 = vsub.f32 %v829_v63, %v893_v7  ;;  %v895_v32 = vmul.f32 2.0, %v3832_v36  ;;  %v2872_v11 = vpop.eup %2871  ;;  %v1078_v53 = vadd.f32 1.0, %v1014_v59 }
 0x163   : > { %v1207_v51 = vadd.f32 %v3805_v61, %v1206_v25  ;;  %v1018_v18 = vmax.f32 %v954_v23, 0.0  ;;  %v958_v45 = vsub.f32 %v830_v39, %v894_v16  ;;  %v1079_v62 = vadd.f32 1.0, %v1015_v28 }
 0x164   : > { %v1171_v60 = vadd.f32 %v3841_v12, %v1170_v17  ;;  %v1019_v0 = vmax.f32 %v955_v52, 0.0  ;;  %v959_v4 = vsub.f32 %v831_v10, %v895_v32  ;;  %v2874_v34 = vpop.eup %2873  ;;  %2883 = vrcp.f32 %v1076_v5 }
 0x165   : > { %v1208_v55 = vadd.f32 %v3844_v38, %v1207_v51  ;;  %v1080_v21 = vadd.f32 1.0, %v1016_v13  ;;  %v1020_v48 = vmax.f32 %v956_v9, 0.0  ;;  %v2876_v31 = vpop.eup %2875  ;;  %2885 = vrcp.f32 %v1077_v46 }
 0x166   : > { %v1172_v36 = vadd.f32 %v3856_v30, %v1171_v60  ;;  %v1081_v33 = vadd.f32 1.0, %v1017_v44  ;;  %v1021_v61 = vmax.f32 %v957_v49, 0.0  ;;  %v2878_v2 = vpop.eup %2877  ;;  %2887 = vrcp.f32 %v1078_v53 }
 0x167   : > { %v1209_v8 = vadd.f32 %v3863_v6, %v1208_v55  ;;  %v1082_v12 = vadd.f32 1.0, %v1018_v18  ;;  %v1022_v14 = vmax.f32 %v958_v45, 0.0  ;;  %v2880_v29 = vpop.eup %2879  ;;  %2889 = vrcp.f32 %v1079_v62 }
 0x168   : > { %v1173_v40 = vadd.f32 %v3874_v42, %v1172_v36  ;;  %v1083_v38 = vadd.f32 1.0, %v1019_v0  ;;  %v1023_v54 = vmax.f32 %v959_v4, 0.0  ;;  %2891 = vrcp.f32 %v1080_v21 }
 0x169   : > { %v1210_v57 = vadd.f32 %v2866_v26, %v1209_v8  ;;  %v1084_v15 = vadd.f32 1.0, %v1020_v48  ;;  %v2882_v35 = vpop.eup %2881  ;;  %2893 = vrcp.f32 %v1081_v33  ;;  %v1085_v56 = vadd.f32 1.0, %v1021_v61 }
 0x16a   : > { %v1174_v30 = vadd.f32 %v2868_v1, %v1173_v40  ;;  %2895 = vrcp.f32 %v1082_v12  ;;  %v1086_v27 = vadd.f32 1.0, %v1022_v14  ;;  %v1087_v63 = vadd.f32 1.0, %v1023_v54  ;;  %v1152_v12 = vld [vmem:[#allocation2] sm:$0x3] }
 0x16b   : > { %v1211_v43 = vadd.f32 %v2870_v19, %v1210_v57  ;;  %2897 = vrcp.f32 %v1083_v38  ;;  %v3118_v53 = vmov 1966171168   ;;  %v1233_v45 = vlaneseq }
 0x16c   : > { %v1175_v6 = vadd.f32 %v2872_v11, %v1174_v30  ;;  %2899 = vrcp.f32 %v1084_v15  ;;  %v1231_v18 = vunpack.c.l.s4 %v3118_v53 }
 0x16d   : > { %v1212_v37 = vadd.f32 %v2874_v34, %v1211_v43  ;;  %2901 = vrcp.f32 %v1085_v56  ;;  %v1234_v55 = vshrl.u32 %v1233_v45, 7  ;;  %vm1248_vm3 = vcmp.lt.s32.totalorder %v1233_v45, 256 }
 0x16e   : > { %v1176_v41 = vadd.f32 %v2876_v31, %v1175_v6  ;;  %v2884_v42 = vpop.eup %2883  ;;  %2903 = vrcp.f32 %v1086_v27  ;;  %v1232_v34 = vunpack.c.0.s8 %v1231_v18 }
 0x16f   : > { %v1213_v58 = vadd.f32 %v2878_v2, %v1212_v37  ;;  %v2886_v22 = vpop.eup %2885  ;;  %2905 = vrcp.f32 %v1087_v63 }
 0x170   : > { %v1177_v23 = vadd.f32 %v2880_v29, %v1176_v41  ;;  %v2888_v47 = vpop.eup %2887  ;;  %v1235_v33 = vsub.s32 %v1232_v34, %v1234_v55 }
 0x171   : > { %v1214_v52 = vadd.f32 %v2882_v35, %v1213_v58  ;;  %v2890_v39 = vpop.eup %2889 }
 0x172   : > { %v1178_v20 = vadd.f32 %v2884_v42, %v1177_v23  ;;  %v2892_v5 = vpop.eup %2891 }
 0x173   : > { %v1215_v10 = vadd.f32 %v2886_v22, %v1214_v52  ;;  %v2894_v26 = vpop.eup %2893 }
 0x174   : > { %v1179_v50 = vadd.f32 %v2888_v47, %v1178_v20  ;;  %v2896_v46 = vpop.eup %2895 }
 0x175   : > { %v1216_v59 = vadd.f32 %v2890_v39, %v1215_v10  ;;  %v2898_v3 = vpop.eup %2897 }
 0x176   : > { %v1180_v1 = vadd.f32 %v2892_v5, %v1179_v50  ;;  %v2900_v24 = vpop.eup %2899 }
 0x177   : > { %v1217_v28 = vadd.f32 %v2894_v26, %v1216_v59  ;;  %v2902_v7 = vpop.eup %2901 }
 0x178   : > { %v1181_v19 = vadd.f32 %v2896_v46, %v1180_v1  ;;  %v2904_v25 = vpop.eup %2903 }
 0x179   : > { %v1218_v13 = vadd.f32 %v2898_v3, %v1217_v28  ;;  %v2906_v9 = vpop.eup %2905 }
 0x17a   : > { %v1182_v16 = vadd.f32 %v2900_v24, %v1181_v19 }
 0x17b   : > { %v1219_v17 = vadd.f32 %v2902_v7, %v1218_v13 }
 0x17c   : > { %v1183_v44 = vadd.f32 %v2904_v25, %v1182_v16 }
 0x17d   : > { %v1220_v49 = vadd.f32 %v2906_v9, %v1219_v17 }
 0x17e   : > { %v1184_v32 = vrot.slane %v1183_v44, 4 }
 0x17f   : > { %v1221_v11 = vrot.slane %v1220_v49, 4 }
 0x180   : > { %v1185_v51 = vadd.f32 %v1184_v32, %v1183_v44 }
 0x181   : > { %v1222_v60 = vadd.f32 %v1221_v11, %v1220_v49 }
 0x182   : > { %v1186_v62 = vrot.slane %v1185_v51, 2 }
 0x183   : > { %v1223_v0 = vrot.slane %v1222_v60, 2 }
 0x184   : > { %v1187_v4 = vadd.f32 %v1186_v62, %v1185_v51 }
 0x185   : > { %v1224_v21 = vadd.f32 %v1223_v0, %v1222_v60 }
 0x186   : > { %v1188_v48 = vrot.slane %v1187_v4, 1 }
 0x187   : > { %v1225_v31 = vrot.slane %v1224_v21, 1 }
 0x188   : > { %v1189_v36 = vadd.f32 %v1188_v48, %v1187_v4 }
 0x189   : > { %v1226_v61 = vadd.f32 %v1225_v31, %v1224_v21 }
 0x18b   : > { %v1229_v2 = vcombine.low %v1189_v36, %v1226_v61 }
 0x18d   : > { %v1236_v8 = vrot.slane %v1229_v2, %v1235_v33 }
 0x18f   : > { %v1243_v14 = vrot.slane %v1236_v8, %v1235_v33 }
 0x191   : > { %v1245_v29 = vadd.f32 %v1243_v14, %v1152_v12 }
 0x193   : > { %1250 = vst.msk [vmem:[#allocation2] sm:$0x3] %vm1248_vm3, %v1245_v29 }
 0x194 PF: > { %p2639_p4 = scmp.ne.s32.totalorder %s3094_s13, %s3090_s12 }
 0x196   : > { %1254 = sbr.rel (%p2639_p4) target bundleno = 767 (0x2ff), region = 40 }
 0x19d   : > { %v1287_v40 = vld [vmem:[%s3239_s17] sm:$0x77]  ;;  %vm1387_vm4 = vcmask 1042432   ;;  %v3119_v57 = vmov 0.0   ;;  %v1257_v15 = vld [vmem:[%s3234_s28 + $0x10] sm:$0xff]  ;;  %vm1290_vm5 = vcmask 23552  }
 0x19e   : > { %v1255_v38 = vld [vmem:[%s3234_s28] sm:$0xff]  ;;  %v1289_v54 = vcombine.high %v1287_v40, %v1287_v40  ;;  %1456 = vmatprep.mubr.f32.mxu0 %v3119_v57  ;;  %1552 = vmatprep.mubr.f32.mxu1 %v3119_v57  ;;  %v1651_v30 = vmul.f32 %v1257_v15, %v1257_v15  ;;  %v1256_v56 = vld [vmem:[%s3234_s28 + $0x8] sm:$0xff]  ;;  %v1258_v43 = vld [vmem:[%s3234_s28 + $0x18] sm:$0xff]  ;;  %v1777_v3 = vmul.f32 %v1287_v40, %v1287_v40 }
 0x19f   : > { %v1649_v35 = vmul.f32 %v1255_v38, %v1255_v38  ;;  %v3913_v27 = vld [vmem:[%s3234_s28 + $0x80] sm:$0xff]  ;;  %v1650_v37 = vmul.f32 %v1256_v56, %v1256_v56  ;;  %v1652_v41 = vmul.f32 %v1258_v43, %v1258_v43  ;;  %v3925_v42 = vld [vmem:[%s3234_s28 + $0x88] sm:$0xff]  ;;  %v3941_v20 = vld [vmem:[%s3234_s28 + $0x90] sm:$0xff] }
 0x1a0   : > { %2640 = vmatprep.subr.msk.mxu0 %vm1387_vm4, %v1289_v54  ;;  %2682 = vmatprep.subr.msk.mxu1 %vm1387_vm4, %v1289_v54  ;;  %v1687_v63 = vsel %vm1290_vm5, %v1651_v30, 0.0  ;;  %v1259_v58 = vld [vmem:[%s3234_s28 + $0x20] sm:$0xff]  ;;  %v3929_v22 = vld [vmem:[%s3234_s28 + $0x28] sm:$0xff]  ;;  %v3944_v5 = vld [vmem:[%s3234_s28 + $0x30] sm:$0xff]  ;;  %v1779_v9 = vcombine.high %v1777_v3, %v1777_v3  ;;  %v3979_v16 = vsel %vm1387_vm4, %v1777_v3, 0.0  ;;  %v1665_v29 = vmul.f32 %v3913_v27, %v3913_v27 }
 0x1a1   : > { %2641 = vmatpush1.msk.msra.mxu0 %vm1387_vm4, %v1287_v40  ;;  %2683 = vmatpush1.msk.msra.mxu1 %vm1387_vm4, %v1287_v40  ;;  %v1681_v6 = vsel %vm1290_vm5, %v1649_v35, 0.0  ;;  %v1684_v23 = vsel %vm1290_vm5, %v1650_v37, 0.0  ;;  %v1690_v47 = vsel %vm1290_vm5, %v1652_v41, 0.0  ;;  %v1653_v52 = vmul.f32 %v1259_v58, %v1259_v58  ;;  %v3947_v10 = vld [vmem:[%s3234_s28 + $0x38] sm:$0xff]  ;;  %v3964_v24 = vld [vmem:[%s3234_s28 + $0x40] sm:$0xff]  ;;  %v3967_v28 = vld [vmem:[%s3234_s28 + $0x48] sm:$0xff] }
 0x1a2   : > { %2642 = vmatmul.mubr.msk.f32.vlgmr.msra.gmra.mrb[0].mxu0 %vm1290_vm5, %v1255_v38  ;;  %2658 = vmatmul.mubr.msk.f32.vlgmr.msra.gmra.mrb[0].mxu1 %vm1290_vm5, %v3913_v27  ;;  %v1654_v39 = vmul.f32 %v3929_v22, %v3929_v22  ;;  %v1655_v46 = vmul.f32 %v3944_v5, %v3944_v5  ;;  %v1656_v59 = vmul.f32 %v3947_v10, %v3947_v10  ;;  %v3961_v1 = vld [vmem:[%s3234_s28 + $0x98] sm:$0xff]  ;;  %v3984_v17 = vld [vmem:[%s3234_s28 + $0xa0] sm:$0xff]  ;;  %v3987_v44 = vld [vmem:[%s3234_s28 + $0x50] sm:$0xff]  ;;  %v3993_v32 = vsel %vm1387_vm4, %v1779_v9, 0.0 }
 0x1a3   : > { %1462 = vmatprep.mubr.f32.mxu0 %v3119_v57  ;;  %1558 = vmatprep.mubr.f32.mxu1 %v3119_v57  ;;  %v1693_v26 = vsel %vm1290_vm5, %v1653_v52, 0.0  ;;  %v1657_v25 = vmul.f32 %v3964_v24, %v3964_v24  ;;  %v1658_v13 = vmul.f32 %v3967_v28, %v3967_v28  ;;  %v3990_v49 = vld [vmem:[%s3234_s28 + $0x58] sm:$0xff]  ;;  %v1659_v53 = vmul.f32 %v3987_v44, %v3987_v44  ;;  %v1276_v45 = vld [vmem:[%s3234_s28 + $0xa8] sm:$0xff]  ;;  %v4008_v60 = vld [vmem:[%s3234_s28 + $0x60] sm:$0xff] }
 0x1a4   : > { %1682 = vadd.xlane.f32.xlu0 %v1681_v6  ;;  %1688 = vadd.xlane.f32.xlu1 %v1687_v63  ;;  %v1696_v50 = vsel %vm1290_vm5, %v1654_v39, 0.0  ;;  %v1699_v7 = vsel %vm1290_vm5, %v1655_v46, 0.0  ;;  %v1702_v19 = vsel %vm1290_vm5, %v1656_v59, 0.0  ;;  %v1660_v18 = vmul.f32 %v3990_v49, %v3990_v49  ;;  %v4011_v62 = vld [vmem:[%s3234_s28 + $0x68] sm:$0xff]  ;;  %v1277_v21 = vld [vmem:[%s3234_s28 + $0xb0] sm:$0xff]  ;;  %v4029_v31 = vld [vmem:[%s3234_s28 + $0x78] sm:$0xff] }
 0x1a5   : > { %v1705_v11 = vsel %vm1290_vm5, %v1657_v25, 0.0  ;;  %v1708_v51 = vsel %vm1290_vm5, %v1658_v13, 0.0  ;;  %v1711_v0 = vsel %vm1290_vm5, %v1659_v53, 0.0  ;;  %v1661_v34 = vmul.f32 %v4008_v60, %v4008_v60  ;;  %v4026_v48 = vld [vmem:[%s3234_s28 + $0x70] sm:$0xff]  ;;  %v1278_v8 = vld [vmem:[%s3234_s28 + $0xb8] sm:$0xff]  ;;  %v1279_v38 = vld [vmem:[%s3234_s28 + $0xc0] sm:$0xff] }
 0x1a6   : > { %2643 = vmatmul.mubr.msk.f32.gmra.mrb[2].mxu0 %vm1290_vm5, %v1256_v56  ;;  %2659 = vmatmul.mubr.msk.f32.gmra.mrb[2].mxu1 %vm1290_vm5, %v3925_v42  ;;  %v1714_v4 = vsel %vm1290_vm5, %v1660_v18, 0.0  ;;  %v1662_v55 = vmul.f32 %v4011_v62, %v4011_v62  ;;  %v1663_v61 = vmul.f32 %v4026_v48, %v4026_v48  ;;  %v1664_v2 = vmul.f32 %v4029_v31, %v4029_v31  ;;  %v1280_v56 = vld [vmem:[%s3234_s28 + $0xc8] sm:$0xff]  ;;  %v1281_v37 = vld [vmem:[%s3234_s28 + $0xd0] sm:$0xff] }
 0x1a7   : > { %1468 = vmatprep.mubr.f32.mxu0 %v3119_v57  ;;  %1564 = vmatprep.mubr.f32.mxu1 %v3119_v57  ;;  %v1717_v36 = vsel %vm1290_vm5, %v1661_v34, 0.0  ;;  %v1666_v40 = vmul.f32 %v3925_v42, %v3925_v42  ;;  %v1729_v54 = vsel %vm1290_vm5, %v1665_v29, 0.0  ;;  %v1667_v35 = vmul.f32 %v3941_v20, %v3941_v20  ;;  %v1284_v59 = vld [vmem:[%s3234_s28 + $0xe8] sm:$0xff] }
 0x1a8   : > { %1685 = vadd.xlane.f32.xlu0 %v1684_v23  ;;  %1691 = vadd.xlane.f32.xlu1 %v1690_v47  ;;  %v1720_v33 = vsel %vm1290_vm5, %v1662_v55, 0.0  ;;  %v1723_v12 = vsel %vm1290_vm5, %v1663_v61, 0.0  ;;  %v1726_v14 = vsel %vm1290_vm5, %v1664_v2, 0.0  ;;  %v1668_v30 = vmul.f32 %v3961_v1, %v3961_v1  ;;  %v1282_v23 = vld [vmem:[%s3234_s28 + $0xd8] sm:$0xff] }
 0x1a9   : > { %v1669_v6 = vmul.f32 %v3984_v17, %v3984_v17  ;;  %v1670_v63 = vmul.f32 %v1276_v45, %v1276_v45  ;;  %v1673_v39 = vmul.f32 %v1279_v38, %v1279_v38  ;;  %v1676_v46 = vmul.f32 %v1282_v23, %v1282_v23 }
 0x1aa   : > { %2644 = vmatmul.mubr.msk.f32.gmra.mrb[4].mxu0 %vm1290_vm5, %v1257_v15  ;;  %2660 = vmatmul.mubr.msk.f32.gmra.mrb[4].mxu1 %vm1290_vm5, %v3941_v20  ;;  %v1732_v15 = vsel %vm1290_vm5, %v1666_v40, 0.0  ;;  %v1738_v27 = vsel %vm1290_vm5, %v1668_v30, 0.0  ;;  %v1674_v20 = vmul.f32 %v1280_v56, %v1280_v56  ;;  %v1789_v55 = vrot.slane %v3993_v32, 4 }
 0x1ab   : > { %1474 = vmatprep.mubr.f32.mxu0 %v3119_v57  ;;  %1570 = vmatprep.mubr.f32.mxu1 %v3119_v57  ;;  %v1741_v41 = vsel %vm1290_vm5, %v1669_v6, 0.0  ;;  %v1744_v42 = vsel %vm1290_vm5, %v1670_v63, 0.0  ;;  %v4714_v40 = vlaneseq }
 0x1ac   : > { %1694 = vadd.xlane.f32.xlu0 %v1693_v26  ;;  %1697 = vadd.xlane.f32.xlu1 %v1696_v50  ;;  %v1756_v26 = vsel %vm1290_vm5, %v1674_v20, 0.0  ;;  %v1675_v50 = vmul.f32 %v1281_v37, %v1281_v37 }
 0x1ad   : > { %v4158_v30 = vand.u32 127, %v4714_v40 }
 0x1ae   : > { %2645 = vmatmul.mubr.msk.f32.gmra.mrb[6].mxu0 %vm1290_vm5, %v1258_v43  ;;  %2661 = vmatmul.mubr.msk.f32.gmra.mrb[6].mxu1 %vm1290_vm5, %v3961_v1  ;;  %v1735_v43 = vsel %vm1290_vm5, %v1667_v35, 0.0  ;;  %v1759_v3 = vsel %vm1290_vm5, %v1675_v50, 0.0  ;;  %v1762_v1 = vsel %vm1290_vm5, %v1676_v46, 0.0 }
 0x1af   : > { %1480 = vmatprep.mubr.f32.mxu0 %v3119_v57  ;;  %1576 = vmatprep.mubr.f32.mxu1 %v3119_v57 }
 0x1b0   : > { %1700 = vadd.xlane.f32.xlu0 %v1699_v7  ;;  %1703 = vadd.xlane.f32.xlu1 %v1702_v19  ;;  %v1285_v7 = vld [vmem:[%s3234_s28 + $0xf0] sm:$0xff]  ;;  %v1286_v19 = vld [vmem:[%s3234_s28 + $0xf8] sm:$0xff] }
 0x1b1   : > { %v1679_v9 = vmul.f32 %v1285_v7, %v1285_v7 }
 0x1b2   : > { %2646 = vmatmul.mubr.msk.f32.gmra.mrb[8].mxu0 %vm1290_vm5, %v1259_v58  ;;  %2662 = vmatmul.mubr.msk.f32.gmra.mrb[8].mxu1 %vm1290_vm5, %v3984_v17  ;;  %v1671_v58 = vmul.f32 %v1277_v21, %v1277_v21  ;;  %v1680_v17 = vmul.f32 %v1286_v19, %v1286_v19 }
 0x1b3   : > { %1486 = vmatprep.mubr.f32.mxu0 %v3119_v57  ;;  %1582 = vmatprep.mubr.f32.mxu1 %v3119_v57 }
 0x1b4   : > { %1706 = vadd.xlane.f32.xlu0 %v1705_v11  ;;  %1709 = vadd.xlane.f32.xlu1 %v1708_v51  ;;  %v1747_v47 = vsel %vm1290_vm5, %v1671_v58, 0.0 }
 0x1b6   : > { %2647 = vmatmul.mubr.msk.f32.gmra.mrb[10].mxu0 %vm1290_vm5, %v3929_v22  ;;  %2663 = vmatmul.mubr.msk.f32.gmra.mrb[10].mxu1 %vm1290_vm5, %v1276_v45  ;;  %v1672_v22 = vmul.f32 %v1278_v8, %v1278_v8 }
 0x1b7   : > { %1492 = vmatprep.mubr.f32.mxu0 %v3119_v57  ;;  %1588 = vmatprep.mubr.f32.mxu1 %v3119_v57 }
 0x1b8   : > { %1712 = vadd.xlane.f32.xlu0 %v1711_v0  ;;  %1715 = vadd.xlane.f32.xlu1 %v1714_v4  ;;  %v1750_v52 = vsel %vm1290_vm5, %v1672_v22, 0.0  ;;  %v1782_v4 = vrot.slane %v3979_v16, 4 }
 0x1ba   : > { %2648 = vmatmul.mubr.msk.f32.gmra.mrb[12].mxu0 %vm1290_vm5, %v3944_v5  ;;  %2664 = vmatmul.mubr.msk.f32.gmra.mrb[12].mxu1 %vm1290_vm5, %v1277_v21  ;;  %v1283_v5 = vld [vmem:[%s3234_s28 + $0xe0] sm:$0xff]  ;;  %v1783_v21 = vadd.f32 %v1782_v4, %v3979_v16 }
 0x1bb   : > { %1498 = vmatprep.mubr.f32.mxu0 %v3119_v57  ;;  %1594 = vmatprep.mubr.f32.mxu1 %v3119_v57 }
 0x1bc   : > { %1718 = vadd.xlane.f32.xlu0 %v1717_v36  ;;  %1721 = vadd.xlane.f32.xlu1 %v1720_v33  ;;  %v1784_v33 = vrot.slane %v1783_v21, 2 }
 0x1be   : > { %2649 = vmatmul.mubr.msk.f32.gmra.mrb[14].mxu0 %vm1290_vm5, %v3947_v10  ;;  %2665 = vmatmul.mubr.msk.f32.gmra.mrb[14].mxu1 %vm1290_vm5, %v1278_v8  ;;  %v1753_v10 = vsel %vm1290_vm5, %v1673_v39, 0.0  ;;  %v1785_v8 = vadd.f32 %v1784_v33, %v1783_v21 }
 0x1bf   : > { %1504 = vmatprep.mubr.f32.mxu0 %v3119_v57  ;;  %1600 = vmatprep.mubr.f32.mxu1 %v3119_v57 }
 0x1c0   : > { %1724 = vadd.xlane.f32.xlu0 %v1723_v12  ;;  %1727 = vadd.xlane.f32.xlu1 %v1726_v14  ;;  %v1786_v29 = vrot.slane %v1785_v8, 1 }
 0x1c2   : > { %2650 = vmatmul.mubr.msk.f32.gmra.mrb[16].mxu0 %vm1290_vm5, %v3964_v24  ;;  %2666 = vmatmul.mubr.msk.f32.gmra.mrb[16].mxu1 %vm1290_vm5, %v1279_v38  ;;  %v1677_v24 = vmul.f32 %v1283_v5, %v1283_v5 }
 0x1c3   : > { %1510 = vmatprep.mubr.f32.mxu0 %v3119_v57  ;;  %1606 = vmatprep.mubr.f32.mxu1 %v3119_v57 }
 0x1c4   : > { %1730 = vadd.xlane.f32.xlu0 %v1729_v54  ;;  %1733 = vadd.xlane.f32.xlu1 %v1732_v15  ;;  %v1765_v25 = vsel %vm1290_vm5, %v1677_v24, 0.0  ;;  %v4150_v15 = vadd.f32 %v1786_v29, %v1785_v8 }
 0x1c6   : > { %2651 = vmatmul.mubr.msk.f32.gmra.mrb[18].mxu0 %vm1290_vm5, %v3967_v28  ;;  %2667 = vmatmul.mubr.msk.f32.gmra.mrb[18].mxu1 %vm1290_vm5, %v1280_v56  ;;  %v1678_v28 = vmul.f32 %v1284_v59, %v1284_v59 }
 0x1c7   : > { %1516 = vmatprep.mubr.f32.mxu0 %v3119_v57  ;;  %1612 = vmatprep.mubr.f32.mxu1 %v3119_v57 }
 0x1c8   : > { %1736 = vadd.xlane.f32.xlu0 %v1735_v43  ;;  %1739 = vadd.xlane.f32.xlu1 %v1738_v27  ;;  %v1768_v13 = vsel %vm1290_vm5, %v1678_v28, 0.0 }
 0x1ca   : > { %2652 = vmatmul.mubr.msk.f32.gmra.mrb[20].mxu0 %vm1290_vm5, %v3987_v44  ;;  %2668 = vmatmul.mubr.msk.f32.gmra.mrb[20].mxu1 %vm1290_vm5, %v1281_v37  ;;  %v1771_v44 = vsel %vm1290_vm5, %v1679_v9, 0.0 }
 0x1cb   : > { %1522 = vmatprep.mubr.f32.mxu0 %v3119_v57  ;;  %1618 = vmatprep.mubr.f32.mxu1 %v3119_v57 }
 0x1cc   : > { %1742 = vadd.xlane.f32.xlu0 %v1741_v41  ;;  %1745 = vadd.xlane.f32.xlu1 %v1744_v42 }
 0x1ce   : > { %2653 = vmatmul.mubr.msk.f32.gmra.mrb[22].mxu0 %vm1290_vm5, %v3990_v49  ;;  %2669 = vmatmul.mubr.msk.f32.gmra.mrb[22].mxu1 %vm1290_vm5, %v1282_v23  ;;  %v1774_v49 = vsel %vm1290_vm5, %v1680_v17, 0.0 }
 0x1cf   : > { %1528 = vmatprep.mubr.f32.mxu0 %v3119_v57  ;;  %1624 = vmatprep.mubr.f32.mxu1 %v3119_v57 }
 0x1d0   : > { %1748 = vadd.xlane.f32.xlu0 %v1747_v47  ;;  %1751 = vadd.xlane.f32.xlu1 %v1750_v52 }
 0x1d2   : > { %2654 = vmatmul.mubr.msk.f32.gmra.mrb[24].mxu0 %vm1290_vm5, %v4008_v60  ;;  %2670 = vmatmul.mubr.msk.f32.gmra.mrb[24].mxu1 %vm1290_vm5, %v1283_v5 }
 0x1d3   : > { %1534 = vmatprep.mubr.f32.mxu0 %v3119_v57  ;;  %1630 = vmatprep.mubr.f32.mxu1 %v3119_v57 }
 0x1d4   : > { %1754 = vadd.xlane.f32.xlu0 %v1753_v10  ;;  %1757 = vadd.xlane.f32.xlu1 %v1756_v26 }
 0x1d6   : > { %2655 = vmatmul.mubr.msk.f32.gmra.mrb[26].mxu0 %vm1290_vm5, %v4011_v62  ;;  %2671 = vmatmul.mubr.msk.f32.gmra.mrb[26].mxu1 %vm1290_vm5, %v1284_v59 }
 0x1d7   : > { %1540 = vmatprep.mubr.f32.mxu0 %v3119_v57  ;;  %1636 = vmatprep.mubr.f32.mxu1 %v3119_v57 }
 0x1d8   : > { %1760 = vadd.xlane.f32.xlu0 %v1759_v3  ;;  %1763 = vadd.xlane.f32.xlu1 %v1762_v1 }
 0x1da   : > { %2656 = vmatmul.mubr.msk.f32.gmra.mrb[28].mxu0 %vm1290_vm5, %v4026_v48  ;;  %2672 = vmatmul.mubr.msk.f32.gmra.mrb[28].mxu1 %vm1290_vm5, %v1285_v7 }
 0x1db   : > { %1546 = vmatprep.mubr.f32.mxu0 %v3119_v57  ;;  %1642 = vmatprep.mubr.f32.mxu1 %v3119_v57 }
 0x1dc   : > { %1766 = vadd.xlane.f32.xlu0 %v1765_v25  ;;  %1769 = vadd.xlane.f32.xlu1 %v1768_v13 }
 0x1de   : > { %2657 = vmatmul.mubr.msk.f32.gmra.mrb[30].mxu0 %vm1290_vm5, %v4029_v31  ;;  %2673 = vmatmul.mubr.msk.f32.gmra.mrb[30].mxu1 %vm1290_vm5, %v1286_v19  ;;  %v1790_v31 = vadd.f32 %v1789_v55, %v3993_v32  ;;  %v4153_v32 = vshrl.u32 %v4714_v40, 7 }
 0x1e0   : > { %1772 = vadd.xlane.f32.xlu0 %v1771_v44  ;;  %1775 = vadd.xlane.f32.xlu1 %v1774_v49  ;;  %v1791_v61 = vrot.slane %v1790_v31, 2  ;;  %4765 = vst [vmem:[#allocation28_spill] sm:$0xff] %v4153_v32  ;;  %v4161_v56 = vadd.s32 8, %v4153_v32  ;;  %v4164_v27 = vadd.s32 16, %v4153_v32  ;;  %v4167_v6 = vadd.s32 24, %v4153_v32 }
 0x1e1   : > { %v4170_v63 = vadd.s32 32, %v4153_v32  ;;  %v4173_v37 = vadd.s32 40, %v4153_v32  ;;  %v4177_v42 = vadd.s32 48, %v4153_v32  ;;  %v4180_v58 = vadd.s32 56, %v4153_v32 }
 0x1e2   : > { %v1792_v14 = vadd.f32 %v1791_v61, %v1790_v31  ;;  %v4183_v22 = vadd.s32 64, %v4153_v32  ;;  %v4190_v5 = vadd.s32 72, %v4153_v32  ;;  %v4193_v10 = vadd.s32 80, %v4153_v32 }
 0x1e3   : > { %v4202_v1 = vadd.s32 88, %v4153_v32  ;;  %v4215_v17 = vadd.s32 96, %v4153_v32  ;;  %vm2215_vm6 = vcmp.lt.s32.totalorder %v4153_v32, %v4158_v30  ;;  %vm2217_vm7 = vcmp.lt.s32.totalorder %v4161_v56, %v4158_v30 }
 0x1e4   : > { %v1793_v54 = vrot.slane %v1792_v14, 1  ;;  %vm2219_vm8 = vcmp.lt.s32.totalorder %v4164_v27, %v4158_v30  ;;  %vm2221_vm9 = vcmp.lt.s32.totalorder %v4167_v6, %v4158_v30  ;;  %vm2223_vm10 = vcmp.lt.s32.totalorder %v4170_v63, %v4158_v30 }
 0x1e5   : > { %vm2225_vm11 = vcmp.lt.s32.totalorder %v4173_v37, %v4158_v30  ;;  %vm2227_vm12 = vcmp.lt.s32.totalorder %v4177_v42, %v4158_v30  ;;  %vm2229_vm13 = vcmp.lt.s32.totalorder %v4180_v58, %v4158_v30  ;;  %vm2231_vm14 = vcmp.lt.s32.totalorder %v4183_v22, %v4158_v30 }
 0x1e6   : > { %v4155_v35 = vadd.f32 %v1793_v54, %v1792_v14  ;;  %vm2233_vm15 = vcmp.lt.s32.totalorder %v4190_v5, %v4158_v30  ;;  %vm2235_vm0 = vcmp.lt.s32.totalorder %v4193_v10, %v4158_v30  ;;  %vm2237_vm1 = vcmp.lt.s32.totalorder %v4202_v1, %v4158_v30 }
 0x1e7   : > { %vm2239_vm2 = vcmp.lt.s32.totalorder %v4215_v17, %v4158_v30 }
 0x231   : > { %v1683_v11 = vpop.xlane.xlu0 %1682  ;;  %v1689_v51 = vpop.xlane.xlu1 %1688 }
 0x232   : > { %v1795_v41 = vadd.f32 %v4150_v15, %v1683_v11  ;;  %v1796_v47 = vadd.f32 %v4155_v35, %v1683_v11  ;;  %v4196_v46 = vadd.f32 %v4150_v15, %v1689_v51  ;;  %v4199_v59 = vadd.f32 %v4155_v35, %v1689_v51 }
 0x235   : > { %v1686_v53 = vpop.xlane.xlu0 %1685  ;;  %v1692_v18 = vpop.xlane.xlu1 %1691 }
 0x236   : > { %v1797_v28 = vadd.f32 %v4150_v15, %v1686_v53  ;;  %v1798_v7 = vadd.f32 %v4155_v35, %v1686_v53  ;;  %v4209_v13 = vadd.f32 %v4150_v15, %v1692_v18  ;;  %v4212_v9 = vadd.f32 %v4155_v35, %v1692_v18 }
 0x239   : > { %v4122_v45 = vpop.xlane.xlu0 %1694  ;;  %v4124_v57 = vpop.xlane.xlu1 %1697 }
 0x23a   : > { %v4219_v11 = vadd.f32 %v4150_v15, %v4122_v45  ;;  %v4228_v31 = vadd.f32 %v4155_v35, %v4122_v45  ;;  %v4232_v33 = vadd.f32 %v4150_v15, %v4124_v57  ;;  %v4236_v29 = vadd.f32 %v4155_v35, %v4124_v57 }
 0x23d   : > { %v4126_v60 = vpop.xlane.xlu0 %1700  ;;  %v4128_v62 = vpop.xlane.xlu1 %1703 }
 0x23e   : > { %v4242_v45 = vadd.f32 %v4150_v15, %v4126_v60  ;;  %v4249_v57 = vadd.f32 %v4155_v35, %v4126_v60  ;;  %v4262_v60 = vadd.f32 %v4155_v35, %v4128_v62 }
 0x241   : > { %v4130_v0 = vpop.xlane.xlu0 %1706  ;;  %v4133_v34 = vpop.xlane.xlu1 %1709 }
 0x245   : > { %v4137_v48 = vpop.xlane.xlu0 %1712  ;;  %v4140_v36 = vpop.xlane.xlu1 %1715 }
 0x249   : > { %v4142_v2 = vpop.xlane.xlu0 %1718  ;;  %v4144_v12 = vpop.xlane.xlu1 %1721 }
 0x24d   : > { %v4146_v38 = vpop.xlane.xlu0 %1724  ;;  %v4148_v16 = vpop.xlane.xlu1 %1727 }
 0x24e   : > { %v4385_v6 = vadd.f32 %v4150_v15, %v4146_v38 }
 0x251   : > { %v1731_v43 = vpop.xlane.xlu0 %1730  ;;  %v1734_v23 = vpop.xlane.xlu1 %1733 }
 0x252   : > { %v4187_v20 = vadd.f32 %v4155_v35, %v1731_v43  ;;  %v4224_v4 = vadd.f32 %v4155_v35, %v1734_v23 }
 0x255   : > { %v1737_v43 = vpop.xlane.xlu0 %1736 }
 0x275   : > { %v1458_v52 = vpop.f32.mrb[0].mxu0  ;;  %v1554_v39 = vpop.f32.mrb[0].mxu1 }
 0x276   : > { %v1859_v26 = vmul.f32 2.0, %v1458_v52  ;;  %v1460_v50 = vpop.f32.mrb[1].mxu0  ;;  %v1556_v3 = vpop.f32.mrb[1].mxu1  ;;  %v4245_v52 = vadd.s32 104, %v4153_v32 }
 0x277   : > { %v1860_v24 = vmul.f32 2.0, %v1460_v50  ;;  %v4206_v19 = vmul.f32 2.0, %v1556_v3 }
 0x278   : > { %v1923_v25 = vsub.f32 %v1795_v41, %v1859_v26  ;;  %vm2241_vm3 = vcmp.lt.s32.totalorder %v4245_v52, %v4158_v30 }
 0x279   : > { %v1924_v44 = vsub.f32 %v1796_v47, %v1860_v24  ;;  %v1464_v49 = vpop.f32.mrb[2].mxu0  ;;  %v1560_v53 = vpop.f32.mrb[2].mxu1 }
 0x27a   : > { %v1987_v55 = vmax.f32 %v1923_v25, 0.0  ;;  %v1861_v21 = vmul.f32 2.0, %v1464_v49  ;;  %v1466_v18 = vpop.f32.mrb[3].mxu0  ;;  %v1562_v61 = vpop.f32.mrb[3].mxu1  ;;  %v4255_v49 = vadd.f32 %v4150_v15, %v4128_v62 }
 0x27b   : > { %v1988_v8 = vmax.f32 %v1924_v44, 0.0  ;;  %v1862_v14 = vmul.f32 2.0, %v1466_v18  ;;  %v4238_v54 = vmul.f32 2.0, %v1562_v61  ;;  %v1740_v47 = vpop.xlane.xlu1 %1739 }
 0x27c   : > { %v2051_v41 = vadd.f32 1.0, %v1987_v55  ;;  %v1925_v23 = vsub.f32 %v1797_v28, %v1861_v21  ;;  %v4258_v55 = vadd.f32 %v4155_v35, %v1737_v43  ;;  %v4274_v62 = vadd.f32 %v4155_v35, %v1740_v47 }
 0x27d   : > { %v2052_v39 = vadd.f32 1.0, %v1988_v8  ;;  %v1926_v26 = vsub.f32 %v1798_v7, %v1862_v14  ;;  %v1470_v50 = vpop.f32.mrb[4].mxu0  ;;  %v1566_v24 = vpop.f32.mrb[4].mxu1  ;;  %v4268_v14 = vadd.s32 112, %v4153_v32 }
 0x27e   : > { %v1989_v28 = vmax.f32 %v1925_v23, 0.0  ;;  %v1863_v25 = vmul.f32 2.0, %v1470_v50  ;;  %v1472_v44 = vpop.f32.mrb[5].mxu0  ;;  %v1568_v53 = vpop.f32.mrb[5].mxu1  ;;  %2908 = vrcp.f32 %v2051_v41 }
 0x27f   : > { %v1990_v7 = vmax.f32 %v1926_v26, 0.0  ;;  %v1864_v21 = vmul.f32 2.0, %v1472_v44  ;;  %v4265_v8 = vmul.f32 2.0, %v1568_v53  ;;  %2910 = vrcp.f32 %v2052_v39  ;;  %v1743_v53 = vpop.xlane.xlu0 %1742 }
 0x280   : > { %v2053_v18 = vadd.f32 1.0, %v1989_v28  ;;  %v1927_v61 = vsub.f32 %v4196_v46, %v1863_v25  ;;  %vm2243_vm4 = vcmp.lt.s32.totalorder %v4268_v14, %v4158_v30 }
 0x281   : > { %v2054_v43 = vadd.f32 1.0, %v1990_v7  ;;  %v1928_v41 = vsub.f32 %v4199_v59, %v1864_v21  ;;  %v1476_v23 = vpop.f32.mrb[6].mxu0  ;;  %v1572_v26 = vpop.f32.mrb[6].mxu1  ;;  %v4285_v21 = vadd.f32 %v4150_v15, %v4130_v0 }
 0x282   : > { %2912 = vrcp.f32 %v2053_v18  ;;  %v1991_v46 = vmax.f32 %v1927_v61, 0.0  ;;  %v1865_v50 = vmul.f32 2.0, %v1476_v23  ;;  %v1478_v24 = vpop.f32.mrb[7].mxu0  ;;  %v1574_v25 = vpop.f32.mrb[7].mxu1  ;;  %v4289_v18 = vadd.f32 %v4155_v35, %v4130_v0 }
 0x283   : > { %2914 = vrcp.f32 %v2054_v43  ;;  %v1992_v39 = vmax.f32 %v1928_v41, 0.0  ;;  %v1866_v44 = vmul.f32 2.0, %v1478_v24  ;;  %v4280_v59 = vmul.f32 2.0, %v1574_v25  ;;  %v1746_v26 = vpop.xlane.xlu1 %1745 }
 0x284   : > { %v2055_v7 = vadd.f32 1.0, %v1991_v46  ;;  %v1929_v47 = vsub.f32 %v4209_v13, %v1865_v50  ;;  %v4294_v41 = vadd.f32 %v4150_v15, %v4133_v34  ;;  %v4301_v25 = vadd.f32 %v4155_v35, %v1743_v53 }
 0x285   : > { %4766 = vst [vmem:[#allocation29_spill] sm:$0xff] %v4280_v59  ;;  %v2056_v61 = vadd.f32 1.0, %v1992_v39  ;;  %v1930_v23 = vsub.f32 %v4212_v9, %v1866_v44  ;;  %v1482_v43 = vpop.f32.mrb[8].mxu0  ;;  %v1578_v13 = vpop.f32.mrb[8].mxu1  ;;  %v4305_v44 = vadd.f32 %v4155_v35, %v4133_v34  ;;  %v4320_v34 = vadd.f32 %v4155_v35, %v4137_v48 }
 0x286   : > { %2916 = vrcp.f32 %v2055_v7  ;;  %v1993_v46 = vmax.f32 %v1929_v47, 0.0  ;;  %v1867_v50 = vmul.f32 2.0, %v1482_v43  ;;  %v1484_v0 = vpop.f32.mrb[9].mxu0  ;;  %v1580_v24 = vpop.f32.mrb[9].mxu1  ;;  %4767 = vst [vmem:[#allocation30_spill] sm:$0xff] %v4301_v25  ;;  %v4311_v47 = vadd.s32 120, %v4153_v32 }
 0x287   : > { %2918 = vrcp.f32 %v2056_v61  ;;  %v1994_v9 = vmax.f32 %v1930_v23, 0.0  ;;  %v1868_v39 = vmul.f32 2.0, %v1484_v0  ;;  %v4308_v13 = vmul.f32 2.0, %v1580_v24 }
 0x288   : > { %v2057_v40 = vadd.f32 1.0, %v1993_v46  ;;  %v1931_v7 = vsub.f32 %v4219_v11, %v1867_v50  ;;  %4769 = vst [vmem:[#allocation32_spill] sm:$0xff] %v4311_v47  ;;  %v2909_v43 = vpop.eup %2908  ;;  %v4316_v61 = vadd.f32 %v4150_v15, %v4137_v48  ;;  %v4328_v48 = vadd.f32 %v4150_v15, %v4140_v36 }
 0x289   : > { %4768 = vst [vmem:[#allocation31_spill] sm:$0xff] %v4308_v13  ;;  %v2058_v28 = vadd.f32 1.0, %v1994_v9  ;;  %v1932_v53 = vsub.f32 %v4228_v31, %v1868_v39  ;;  %v1488_v23 = vpop.f32.mrb[10].mxu0  ;;  %v1584_v11 = vpop.f32.mrb[10].mxu1  ;;  %v4335_v51 = vadd.f32 %v4155_v35, %v1746_v26 }
 0x28a   : > { %2920 = vrcp.f32 %v2057_v40  ;;  %v1995_v46 = vmax.f32 %v1931_v7, 0.0  ;;  %v1869_v50 = vmul.f32 2.0, %v1488_v23  ;;  %v1490_v0 = vpop.f32.mrb[11].mxu0  ;;  %v1586_v24 = vpop.f32.mrb[11].mxu1  ;;  %v2279_v40 = vsel %vm2215_vm6, %v2909_v43, 0.0 }
 0x28b   : > { %v2911_v9 = vpop.eup %2910  ;;  %2922 = vrcp.f32 %v2058_v28  ;;  %v1996_v39 = vmax.f32 %v1932_v53, 0.0  ;;  %v1870_v3 = vmul.f32 2.0, %v1490_v0  ;;  %v4341_v13 = vmul.f32 2.0, %v1586_v24 }
 0x28c   : > { %v2913_v11 = vpop.eup %2912  ;;  %v2059_v7 = vadd.f32 1.0, %v1995_v46  ;;  %v1933_v23 = vsub.f32 %v4232_v33, %v1869_v50 }
 0x28d   : > { %v2915_v31 = vpop.eup %2914  ;;  %v2281_v28 = vsel %vm2217_vm7, %v2913_v11, 0.0  ;;  %v2060_v53 = vadd.f32 1.0, %v1996_v39  ;;  %v1934_v0 = vsub.f32 %v4236_v29, %v1870_v3  ;;  %v1494_v47 = vpop.f32.mrb[12].mxu0  ;;  %v4347_v29 = vadd.f32 %v4155_v35, %v4140_v36 }
 0x28e   : > { %v1590_v25 = vpop.f32.mrb[12].mxu1  ;;  %v2344_v32 = vadd.f32 %v2281_v28, %v2279_v40  ;;  %v2381_v43 = vadd.f32 %v2915_v31, %v2911_v9  ;;  %2924 = vrcp.f32 %v2059_v7  ;;  %v1997_v33 = vmax.f32 %v1933_v23, 0.0  ;;  %v1496_v26 = vpop.f32.mrb[13].mxu0 }
 0x28f   : > { %v1592_v46 = vpop.f32.mrb[13].mxu1  ;;  %2926 = vrcp.f32 %v2060_v53  ;;  %v1998_v50 = vmax.f32 %v1934_v0, 0.0  ;;  %v1871_v56 = vmul.f32 2.0, %v1494_v47  ;;  %v1872_v11 = vmul.f32 2.0, %v1496_v26 }
 0x290   : > { %v2917_v39 = vpop.eup %2916  ;;  %v2061_v59 = vadd.f32 1.0, %v1997_v33  ;;  %v4351_v3 = vadd.f32 %v4150_v15, %v4142_v2  ;;  %v4778_v17 = vsub.f32 %v4335_v51, %v4341_v13 }
 0x291   : > { %v2919_v31 = vpop.eup %2918  ;;  %v2283_v24 = vsel %vm2219_vm8, %v2917_v39, 0.0  ;;  %v2062_v47 = vadd.f32 1.0, %v1998_v50  ;;  %v1935_v9 = vsub.f32 %v4242_v45, %v1871_v56  ;;  %v1936_v40 = vsub.f32 %v4249_v57, %v1872_v11  ;;  %v1500_v7 = vpop.f32.mrb[14].mxu0 }
 0x292   : > { %v1596_v36 = vpop.f32.mrb[14].mxu1  ;;  %v2345_v23 = vadd.f32 %v2344_v32, %v2283_v24  ;;  %v2382_v28 = vadd.f32 %v2919_v31, %v2381_v43  ;;  %2928 = vrcp.f32 %v2061_v59  ;;  %v1873_v53 = vmul.f32 2.0, %v1500_v7  ;;  %v1502_v0 = vpop.f32.mrb[15].mxu0 }
 0x293   : > { %v1598_v33 = vpop.f32.mrb[15].mxu1  ;;  %2930 = vrcp.f32 %v2062_v47  ;;  %v1999_v26 = vmax.f32 %v1935_v9, 0.0  ;;  %v2000_v27 = vmax.f32 %v1936_v40, 0.0  ;;  %v1874_v39 = vmul.f32 2.0, %v1502_v0  ;;  %v1749_v43 = vpop.xlane.xlu0 %1748 }
 0x294   : > { %v2921_v50 = vpop.eup %2920  ;;  %v4364_v45 = vadd.f32 %v4155_v35, %v4142_v2  ;;  %v4368_v32 = vadd.f32 %v4150_v15, %v4144_v12  ;;  %v4372_v57 = vadd.f32 %v4155_v35, %v4144_v12  ;;  %v1937_v59 = vsub.f32 %v4255_v49, %v1873_v53 }
 0x295   : > { %v2923_v56 = vpop.eup %2922  ;;  %v2285_v11 = vsel %vm2221_vm9, %v2921_v50, 0.0  ;;  %v2063_v31 = vadd.f32 1.0, %v1999_v26  ;;  %v2064_v24 = vadd.f32 1.0, %v2000_v27  ;;  %v1938_v2 = vsub.f32 %v4262_v60, %v1874_v39  ;;  %v1506_v47 = vpop.f32.mrb[16].mxu0 }
 0x296   : > { %v1602_v9 = vpop.f32.mrb[16].mxu1  ;;  %v2346_v40 = vadd.f32 %v2345_v23, %v2285_v11  ;;  %v2383_v7 = vadd.f32 %v2923_v56, %v2382_v28  ;;  %v2001_v36 = vmax.f32 %v1937_v59, 0.0  ;;  %v1875_v0 = vmul.f32 2.0, %v1506_v47  ;;  %v1508_v12 = vpop.f32.mrb[17].mxu0 }
 0x297   : > { %v4379_v25 = vpop.f32.mrb[17].mxu1  ;;  %2932 = vrcp.f32 %v2063_v31  ;;  %v2002_v49 = vmax.f32 %v1938_v2, 0.0  ;;  %v1876_v53 = vmul.f32 2.0, %v1508_v12  ;;  %v4389_v28 = vadd.f32 %v4155_v35, %v1749_v43  ;;  %v1752_v27 = vpop.xlane.xlu1 %1751 }
 0x298   : > { %v2925_v60 = vpop.eup %2924  ;;  %2934 = vrcp.f32 %v2064_v24  ;;  %v2065_v26 = vadd.f32 1.0, %v2001_v36  ;;  %v1939_v23 = vsub.f32 %v4285_v21, %v1875_v0  ;;  %v4395_v31 = vmul.f32 2.0, %v1592_v46 }
 0x299   : > { %v2927_v39 = vpop.eup %2926  ;;  %v2287_v50 = vsel %vm2223_vm10, %v2925_v60, 0.0  ;;  %v2066_v59 = vadd.f32 1.0, %v2002_v49  ;;  %v1940_v56 = vsub.f32 %v4289_v18, %v1876_v53  ;;  %v1512_v11 = vpop.f32.mrb[18].mxu0  ;;  %v4403_v49 = vmul.f32 2.0, %v1598_v33 }
 0x29a   : > { %v1608_v2 = vpop.f32.mrb[18].mxu1  ;;  %v2347_v24 = vadd.f32 %v2346_v40, %v2287_v50  ;;  %v2384_v47 = vadd.f32 %v2927_v39, %v2383_v7  ;;  %2936 = vrcp.f32 %v2065_v26  ;;  %v2003_v21 = vmax.f32 %v1939_v23, 0.0  ;;  %v1514_v43 = vpop.f32.mrb[19].mxu0 }
 0x29b   : > { %v4399_v9 = vpop.f32.mrb[19].mxu1  ;;  %2938 = vrcp.f32 %v2066_v59  ;;  %v2004_v63 = vmax.f32 %v1940_v56, 0.0  ;;  %v1877_v36 = vmul.f32 2.0, %v1512_v11  ;;  %v1878_v0 = vmul.f32 2.0, %v1514_v43  ;;  %v1755_v7 = vpop.xlane.xlu0 %1754 }
 0x29c   : > { %v2929_v12 = vpop.eup %2928  ;;  %v2067_v18 = vadd.f32 1.0, %v2003_v21  ;;  %v1968_v46 = vsub.f32 %v4389_v28, %v4395_v31  ;;  %v4406_v40 = vadd.f32 %v4155_v35, %v1752_v27  ;;  %v4497_v5 = vmul.f32 2.0, %v4399_v9 }
 0x29d   : > { %v2931_v53 = vpop.eup %2930  ;;  %v2289_v60 = vsel %vm2225_vm11, %v2929_v12, 0.0  ;;  %v2068_v26 = vadd.f32 1.0, %v2004_v63  ;;  %v1941_v23 = vsub.f32 %v4294_v41, %v1877_v36  ;;  %v1942_v39 = vsub.f32 %v4305_v44, %v1878_v0  ;;  %v1518_v50 = vpop.f32.mrb[20].mxu0 }
 0x29e   : > { %v1614_v59 = vpop.f32.mrb[20].mxu1  ;;  %v2348_v56 = vadd.f32 %v2347_v24, %v2289_v60  ;;  %v2385_v11 = vadd.f32 %v2931_v53, %v2384_v47  ;;  %2940 = vrcp.f32 %v2067_v18  ;;  %v1879_v33 = vmul.f32 2.0, %v1518_v50  ;;  %v1520_v27 = vpop.f32.mrb[21].mxu0 }
 0x29f   : > { %v4415_v2 = vpop.f32.mrb[21].mxu1  ;;  %2942 = vrcp.f32 %v2068_v26  ;;  %v2005_v37 = vmax.f32 %v1941_v23, 0.0  ;;  %v2006_v21 = vmax.f32 %v1942_v39, 0.0  ;;  %v1880_v43 = vmul.f32 2.0, %v1520_v27  ;;  %v1758_v63 = vpop.xlane.xlu1 %1757 }
 0x2a0   : > { %v4419_v41 = vadd.f32 %v4155_v35, %v4146_v38  ;;  %v4423_v44 = vadd.f32 %v4150_v15, %v4148_v16  ;;  %v1943_v24 = vsub.f32 %v4316_v61, %v1879_v33  ;;  %v1970_v47 = vsub.f32 %v4406_v40, %v4403_v49 }
 0x2a1   : > { %v2933_v36 = vpop.eup %2932  ;;  %v2069_v0 = vadd.f32 1.0, %v2005_v37  ;;  %v2070_v12 = vadd.f32 1.0, %v2006_v21  ;;  %v1944_v18 = vsub.f32 %v4320_v34, %v1880_v43  ;;  %v1524_v53 = vpop.f32.mrb[22].mxu0  ;;  %v4430_v60 = vadd.f32 %v4155_v35, %v1755_v7 }
 0x2a2   : > { %v1620_v38 = vpop.f32.mrb[22].mxu1  ;;  %v2935_v26 = vpop.eup %2934  ;;  %v2291_v15 = vsel %vm2227_vm12, %v2933_v36, 0.0  ;;  %v2007_v61 = vmax.f32 %v1943_v24, 0.0  ;;  %v1881_v23 = vmul.f32 2.0, %v1524_v53  ;;  %v4436_v50 = vmul.f32 2.0, %v4379_v25 }
 0x2a3   : > { %v1526_v39 = vpop.f32.mrb[23].mxu0  ;;  %v4438_v59 = vpop.f32.mrb[23].mxu1  ;;  %v2349_v33 = vadd.f32 %v2348_v56, %v2291_v15  ;;  %v2386_v34 = vadd.f32 %v2935_v26, %v2385_v11  ;;  %2944 = vrcp.f32 %v2069_v0  ;;  %v2008_v7 = vmax.f32 %v1944_v18, 0.0 }
 0x2a4   : > { %v2937_v27 = vpop.eup %2936  ;;  %2946 = vrcp.f32 %v2070_v12  ;;  %v2071_v37 = vadd.f32 1.0, %v2007_v61  ;;  %v1945_v42 = vsub.f32 %v4328_v48, %v1881_v23  ;;  %v1882_v21 = vmul.f32 2.0, %v1526_v39  ;;  %v1761_v43 = vpop.xlane.xlu0 %1760 }
 0x2a5   : > { %v1764_v24 = vpop.xlane.xlu1 %1763  ;;  %v2939_v36 = vpop.eup %2938  ;;  %v2293_v25 = vsel %vm2229_vm13, %v2937_v27, 0.0  ;;  %v4448_v56 = vadd.f32 %v4155_v35, %v4148_v16  ;;  %v2072_v11 = vadd.f32 1.0, %v2008_v7  ;;  %v4451_v18 = vadd.f32 %v4155_v35, %v1758_v63 }
 0x2a6   : > { %v1530_v0 = vpop.f32.mrb[24].mxu0  ;;  %v1626_v12 = vpop.f32.mrb[24].mxu1  ;;  %v2350_v53 = vadd.f32 %v2349_v33, %v2293_v25  ;;  %v2387_v48 = vadd.f32 %v2939_v36, %v2386_v34  ;;  %2948 = vrcp.f32 %v2071_v37  ;;  %v2009_v38 = vmax.f32 %v1945_v42, 0.0 }
 0x2a7   : > { %v1532_v26 = vpop.f32.mrb[25].mxu0  ;;  %v4455_v58 = vpop.f32.mrb[25].mxu1  ;;  %2950 = vrcp.f32 %v2072_v11  ;;  %v1946_v16 = vsub.f32 %v4347_v29, %v1882_v21  ;;  %v1883_v15 = vmul.f32 2.0, %v1530_v0  ;;  %v4770_v63 = vsub.f32 %v4187_v20, %v4206_v19 }
 0x2a8   : > { %v1884_v61 = vmul.f32 2.0, %v1532_v26  ;;  %v2941_v23 = vpop.eup %2940  ;;  %v2073_v33 = vadd.f32 1.0, %v2009_v38  ;;  %v1972_v34 = vsub.f32 %v4430_v60, %v4436_v50  ;;  %v4464_v7 = vadd.f32 %v4155_v35, %v1761_v43  ;;  %v1767_v27 = vpop.xlane.xlu0 %1766 }
 0x2a9   : > { %v2020_v39 = vmax.f32 %v4770_v63, 0.0  ;;  %v1770_v37 = vpop.xlane.xlu1 %1769  ;;  %v2943_v42 = vpop.eup %2942  ;;  %v2295_v29 = vsel %vm2231_vm14, %v2941_v23, 0.0  ;;  %v2010_v21 = vmax.f32 %v1946_v16, 0.0  ;;  %v1947_v36 = vsub.f32 %v4351_v3, %v1883_v15 }
 0x2aa   : > { %v1948_v20 = vsub.f32 %v4364_v45, %v1884_v61  ;;  %v1536_v19 = vpop.f32.mrb[26].mxu0  ;;  %v1632_v25 = vpop.f32.mrb[26].mxu1  ;;  %v2351_v11 = vadd.f32 %v2350_v53, %v2295_v29  ;;  %v2388_v0 = vadd.f32 %v2943_v42, %v2387_v48  ;;  %2952 = vrcp.f32 %v2073_v33 }
 0x2ab   : > { %v1885_v43 = vmul.f32 2.0, %v1536_v19  ;;  %v1538_v12 = vpop.f32.mrb[27].mxu0  ;;  %v4473_v38 = vpop.f32.mrb[27].mxu1  ;;  %v2074_v26 = vadd.f32 1.0, %v2010_v21  ;;  %v2011_v22 = vmax.f32 %v1947_v36, 0.0  ;;  %v4477_v45 = vadd.f32 %v4155_v35, %v1764_v24 }
 0x2ac   : > { %v2012_v23 = vmax.f32 %v1948_v20, 0.0  ;;  %v1886_v16 = vmul.f32 2.0, %v1538_v12  ;;  %v4480_v53 = vadd.f32 %v4155_v35, %v1767_v27  ;;  %v4483_v48 = vadd.f32 %v4155_v35, %v1770_v37 }
 0x2ad   : > { %v1949_v3 = vsub.f32 %v4368_v32, %v1885_v43  ;;  %v2945_v15 = vpop.eup %2944  ;;  %2954 = vrcp.f32 %v2074_v26  ;;  %v2075_v61 = vadd.f32 1.0, %v2011_v22  ;;  %v1542_v42 = vpop.f32.mrb[28].mxu0  ;;  %v4486_v36 = vadd.f32 1.0, %v2020_v39 }
 0x2ae   : > { %v2076_v63 = vadd.f32 1.0, %v2012_v23  ;;  %v1950_v33 = vsub.f32 %v4372_v57, %v1886_v16  ;;  %v1638_v29 = vpop.f32.mrb[28].mxu1  ;;  %v2947_v21 = vpop.eup %2946  ;;  %v2297_v32 = vsel %vm2233_vm15, %v2945_v15, 0.0  ;;  %v1887_v27 = vmul.f32 2.0, %v1542_v42 }
 0x2af   : > { %v2013_v24 = vmax.f32 %v1949_v3, 0.0  ;;  %v1544_v20 = vpop.f32.mrb[29].mxu0  ;;  %v4491_v37 = vpop.f32.mrb[29].mxu1  ;;  %v2352_v19 = vadd.f32 %v2351_v11, %v2297_v32  ;;  %v2389_v25 = vadd.f32 %v2947_v21, %v2388_v0  ;;  %2956 = vrcp.f32 %v2075_v61 }
 0x2b0   : > { %v2014_v57 = vmax.f32 %v1950_v33, 0.0  ;;  %v2949_v43 = vpop.eup %2948  ;;  %2958 = vrcp.f32 %v2076_v63  ;;  %v1951_v12 = vsub.f32 %v4385_v6, %v1887_v27  ;;  %v4771_v22 = vsub.f32 %v4224_v4, %v4238_v54  ;;  %v1773_v27 = vpop.xlane.xlu0 %1772 }
 0x2b1   : > { %v2077_v39 = vadd.f32 1.0, %v2013_v24  ;;  %v2951_v26 = vpop.eup %2950  ;;  %v2299_v11 = vsel %vm2235_vm0, %v2949_v43, 0.0  ;;  %v1888_v16 = vmul.f32 2.0, %v1544_v20  ;;  %v1548_v3 = vpop.f32.mrb[30].mxu0  ;;  %v1974_v21 = vsub.f32 %v4451_v18, %v4497_v5 }
 0x2b2   : > { %v2022_v23 = vmax.f32 %v4771_v22, 0.0  ;;  %v2078_v0 = vadd.f32 1.0, %v2014_v57  ;;  %v1644_v15 = vpop.f32.mrb[30].mxu1  ;;  %v2353_v61 = vadd.f32 %v2352_v19, %v2299_v11  ;;  %v2390_v63 = vadd.f32 %v2951_v26, %v2389_v25  ;;  %v1550_v9 = vpop.f32.mrb[31].mxu0  ;;  %v4773_v22 = vld [vmem:[#allocation29_spill] sm:$0xff] }
 0x2b3   : > { %2960 = vrcp.f32 %v2077_v39  ;;  %v2015_v6 = vmax.f32 %v1951_v12, 0.0  ;;  %v1646_v33 = vpop.f32.mrb[31].mxu1  ;;  %v1952_v4 = vsub.f32 %v4419_v41, %v1888_v16  ;;  %v1889_v54 = vmul.f32 2.0, %v1548_v3 }
 0x2b4   : > { %2962 = vrcp.f32 %v2078_v0  ;;  %v1890_v42 = vmul.f32 2.0, %v1550_v9  ;;  %v2953_v10 = vpop.eup %2952  ;;  %v4511_v32 = vmul.f32 2.0, %v4415_v2  ;;  %v4514_v24 = vmul.f32 2.0, %v4438_v59 }
 0x2b5   : > { %v2079_v29 = vadd.f32 1.0, %v2015_v6  ;;  %v2301_v20 = vsel %vm2237_vm1, %v2953_v10, 0.0  ;;  %v2016_v19 = vmax.f32 %v1952_v4, 0.0  ;;  %v1953_v41 = vsub.f32 %v4423_v44, %v1889_v54  ;;  %v1776_v6 = vpop.xlane.xlu1 %1775  ;;  %v4775_v4 = vld [vmem:[#allocation30_spill] sm:$0xff]  ;;  %v4776_v54 = vld [vmem:[#allocation31_spill] sm:$0xff] }
 0x2b6   : > { %v1954_v25 = vsub.f32 %v4448_v56, %v1890_v42  ;;  %v4772_v57 = vsub.f32 %v4258_v55, %v4265_v8  ;;  %v2354_v39 = vadd.f32 %v2353_v61, %v2301_v20  ;;  %v1976_v2 = vsub.f32 %v4464_v7, %v4511_v32 }
 0x2b7   : > { %2964 = vrcp.f32 %v2079_v29  ;;  %v2955_v59 = vpop.eup %2954  ;;  %v2080_v1 = vadd.f32 1.0, %v2016_v19  ;;  %v2017_v12 = vmax.f32 %v1953_v41, 0.0  ;;  %v4529_v44 = vadd.f32 %v4155_v35, %v1773_v27 }
 0x2b8   : > { %v2024_v43 = vmax.f32 %v4772_v57, 0.0  ;;  %v2018_v26 = vmax.f32 %v1954_v25, 0.0  ;;  %v2086_v56 = vadd.f32 1.0, %v2022_v23  ;;  %v4774_v55 = vsub.f32 %v4274_v62, %v4773_v22 }
 0x2b9   : > { %v2391_v11 = vadd.f32 %v2955_v59, %v2390_v63  ;;  %v1978_v0 = vsub.f32 %v4477_v45, %v4514_v24  ;;  %v2957_v16 = vpop.eup %2956  ;;  %2966 = vrcp.f32 %v2080_v1  ;;  %v2081_v3 = vadd.f32 1.0, %v2017_v12  ;;  %v4779_v12 = vld [vmem:[#allocation28_spill] sm:$0xff] }
 0x2ba   : > { %v2026_v8 = vmax.f32 %v4774_v55, 0.0  ;;  %v2082_v15 = vadd.f32 1.0, %v2018_v26  ;;  %v4537_v61 = vmul.f32 2.0, %v4455_v58  ;;  %v2959_v9 = vpop.eup %2958  ;;  %2968 = vrcp.f32 %v4486_v36  ;;  %v4780_v55 = vld [vmem:[#allocation32_spill] sm:$0xff] }
 0x2bb   : > { %v2088_v23 = vadd.f32 1.0, %v2024_v43  ;;  %v4777_v62 = vsub.f32 %v4775_v4, %v4776_v54  ;;  %v2303_v63 = vsel %vm2239_vm2, %v2957_v16, 0.0  ;;  %v2392_v29 = vadd.f32 %v2959_v9, %v2391_v11 }
 0x2bc   : > { %v2355_v10 = vadd.f32 %v2354_v39, %v2303_v63  ;;  %2970 = vrcp.f32 %v2081_v3  ;;  %v1980_v58 = vsub.f32 %v4480_v53, %v4537_v61  ;;  %v2090_v20 = vadd.f32 1.0, %v2026_v8 }
 0x2bd   : > { %v2028_v42 = vmax.f32 %v4777_v62, 0.0  ;;  %v2961_v27 = vpop.eup %2960  ;;  %2972 = vrcp.f32 %v2082_v15  ;;  %v4549_v36 = vmul.f32 2.0, %v4473_v38  ;;  %v4552_v19 = vadd.f32 %v4155_v35, %v1776_v6 }
 0x2be   : > { %v2963_v41 = vpop.eup %2962  ;;  %2974 = vrcp.f32 %v2086_v56  ;;  %v2030_v25 = vmax.f32 %v4778_v17, 0.0  ;;  %v2305_v57 = vsel %vm2241_vm3, %v2961_v27, 0.0  ;;  %v4561_v43 = vmul.f32 2.0, %v4491_v37 }
 0x2bf   : > { %v2356_v39 = vadd.f32 %v2355_v10, %v2305_v57  ;;  %v2393_v59 = vadd.f32 %v2963_v41, %v2392_v29  ;;  %v2032_v35 = vmax.f32 %v1968_v46, 0.0  ;;  %v1982_v38 = vsub.f32 %v4483_v48, %v4549_v36 }
 0x2c0   : > { %2976 = vrcp.f32 %v2088_v23  ;;  %v2092_v1 = vadd.f32 1.0, %v2028_v42  ;;  %v1984_v51 = vsub.f32 %v4529_v44, %v4561_v43  ;;  %v4570_v13 = vmul.f32 2.0, %v1646_v33 }
 0x2c1   : > { %v2965_v52 = vpop.eup %2964  ;;  %v2196_v37 = vadd.s32 128, %v4779_v12  ;;  %v4574_v26 = vadd.s32 128, %v4158_v30  ;;  %2978 = vrcp.f32 %v2090_v20  ;;  %v2094_v56 = vadd.f32 1.0, %v2030_v25 }
 0x2c2   : > { %v2307_v28 = vsel %vm2243_vm4, %v2965_v52, 0.0  ;;  %v2034_v31 = vmax.f32 %v1970_v47, 0.0  ;;  %v1986_v46 = vsub.f32 %v4552_v19, %v4570_v13  ;;  %v2197_v48 = vadd.s32 136, %v4779_v12 }
 0x2c3   : > { %v2096_v33 = vadd.f32 1.0, %v2032_v35  ;;  %v2357_v44 = vadd.f32 %v2356_v39, %v2307_v28  ;;  %v2967_v22 = vpop.eup %2966  ;;  %2980 = vrcp.f32 %v2092_v1  ;;  %vm2245_vm5 = vcmp.lt.s32.totalorder %v4780_v55, %v4158_v30 }
 0x2c4   : > { %v2036_v14 = vmax.f32 %v1972_v34, 0.0  ;;  %v2969_v8 = vpop.eup %2968  ;;  %v2198_v49 = vadd.s32 144, %v4779_v12  ;;  %v2394_v40 = vadd.f32 %v2967_v22, %v2393_v59  ;;  %vm2248_vm6 = vcmp.lt.s32.totalorder %v2196_v37, %v4574_v26 }
 0x2c5   : > { %2982 = vrcp.f32 %v2094_v56  ;;  %v2098_v11 = vadd.f32 1.0, %v2034_v31  ;;  %v2038_v16 = vmax.f32 %v1974_v21, 0.0  ;;  %vm2250_vm7 = vcmp.lt.s32.totalorder %v2197_v48, %v4574_v26 }
 0x2c6   : > { %v2971_v47 = vpop.eup %2970  ;;  %v2199_v30 = vadd.s32 152, %v4779_v12  ;;  %2984 = vrcp.f32 %v2096_v33  ;;  %v2100_v6 = vadd.f32 1.0, %v2036_v14  ;;  %v2040_v9 = vmax.f32 %v1976_v2, 0.0 }
 0x2c7   : > { %v2973_v3 = vpop.eup %2972  ;;  %v2309_v60 = vsel %vm2245_vm5, %v2971_v47, 0.0  ;;  %v2312_v23 = vsel %vm2248_vm6, %v2969_v8, 0.0  ;;  %vm2252_vm8 = vcmp.lt.s32.totalorder %v2198_v49, %v4574_v26  ;;  %v2200_v18 = vadd.s32 160, %v4779_v12 }
 0x2c8   : > { %v2975_v50 = vpop.eup %2974  ;;  %v4597_v34 = vadd.f32 %v2357_v44, %v2309_v60  ;;  %v2395_v15 = vadd.f32 %v2973_v3, %v2394_v40  ;;  %2986 = vrcp.f32 %v2098_v11  ;;  %v2102_v4 = vadd.f32 1.0, %v2038_v16 }
 0x2c9   : > { %v2042_v54 = vmax.f32 %v1978_v0, 0.0  ;;  %v2314_v42 = vsel %vm2250_vm7, %v2975_v50, 0.0  ;;  %vm2254_vm9 = vcmp.lt.s32.totalorder %v2199_v30, %v4574_v26  ;;  %v2201_v7 = vadd.s32 168, %v4779_v12 }
 0x2ca   : > { %v2977_v5 = vpop.eup %2976  ;;  %v2396_v21 = vadd.f32 %v2395_v15, %v2312_v23  ;;  %2988 = vrcp.f32 %v2100_v6  ;;  %v2104_v2 = vadd.f32 1.0, %v2040_v9  ;;  %v2044_v63 = vmax.f32 %v1980_v58, 0.0 }
 0x2cb   : > { %v2979_v62 = vpop.eup %2978  ;;  %v2316_v10 = vsel %vm2252_vm8, %v2977_v5, 0.0  ;;  %vm2256_vm10 = vcmp.lt.s32.totalorder %v2200_v18, %v4574_v26  ;;  %v2202_v45 = vadd.s32 176, %v4779_v12  ;;  %2990 = vrcp.f32 %v2102_v4 }
 0x2cc   : > { %v2397_v32 = vadd.f32 %v2396_v21, %v2314_v42  ;;  %v2106_v29 = vadd.f32 1.0, %v2042_v54  ;;  %v2046_v27 = vmax.f32 %v1982_v38, 0.0  ;;  %v2318_v20 = vsel %vm2254_vm9, %v2979_v62, 0.0 }
 0x2cd   : > { %v2981_v24 = vpop.eup %2980  ;;  %vm2258_vm11 = vcmp.lt.s32.totalorder %v2201_v7, %v4574_v26  ;;  %v2203_v36 = vadd.s32 184, %v4779_v12  ;;  %v2048_v19 = vmax.f32 %v1984_v51, 0.0  ;;  %2992 = vrcp.f32 %v2104_v2 }
 0x2ce   : > { %v2398_v0 = vadd.f32 %v2397_v32, %v2316_v10  ;;  %v2108_v53 = vadd.f32 1.0, %v2044_v63  ;;  %v2050_v61 = vmax.f32 %v1986_v46, 0.0  ;;  %v2320_v25 = vsel %vm2256_vm10, %v2981_v24, 0.0 }
 0x2cf   : > { %v2983_v41 = vpop.eup %2982  ;;  %vm2260_vm12 = vcmp.lt.s32.totalorder %v2202_v45, %v4574_v26  ;;  %v2204_v57 = vadd.s32 192, %v4779_v12  ;;  %2994 = vrcp.f32 %v2106_v29  ;;  %v2110_v39 = vadd.f32 1.0, %v2046_v27 }
 0x2d0   : > { %v2399_v17 = vadd.f32 %v2398_v0, %v2318_v20  ;;  %v2985_v58 = vpop.eup %2984  ;;  %v2322_v59 = vsel %vm2258_vm11, %v2983_v41, 0.0  ;;  %vm2262_vm13 = vcmp.lt.s32.totalorder %v2203_v36, %v4574_v26  ;;  %v2112_v35 = vadd.f32 1.0, %v2048_v19 }
 0x2d1   : > { %v2205_v51 = vadd.s32 200, %v4779_v12  ;;  %2996 = vrcp.f32 %v2108_v53  ;;  %v2114_v13 = vadd.f32 1.0, %v2050_v61  ;;  %v2324_v52 = vsel %vm2260_vm12, %v2985_v58, 0.0  ;;  %v2343_v58 = vld [vmem:[#allocation2] sm:$0x3] }
 0x2d2   : > { %v2400_v43 = vadd.f32 %v2399_v17, %v2320_v25  ;;  %v2987_v38 = vpop.eup %2986  ;;  %vm2264_vm14 = vcmp.lt.s32.totalorder %v2204_v57, %v4574_v26  ;;  %v2206_v28 = vadd.s32 208, %v4779_v12  ;;  %2998 = vrcp.f32 %v2110_v39 }
 0x2d3   : > { %v2326_v31 = vsel %vm2262_vm13, %v2987_v38, 0.0  ;;  %3000 = vrcp.f32 %v2112_v35  ;;  %vm2266_vm15 = vcmp.lt.s32.totalorder %v2205_v51, %v4574_v26  ;;  %v2207_v33 = vadd.s32 216, %v4779_v12 }
 0x2d4   : > { %v2401_v1 = vadd.f32 %v2400_v43, %v2322_v59  ;;  %v2989_v37 = vpop.eup %2988  ;;  %3002 = vrcp.f32 %v2114_v13  ;;  %vm2268_vm0 = vcmp.lt.s32.totalorder %v2206_v28, %v4574_v26  ;;  %v2208_v14 = vadd.s32 224, %v4779_v12 }
 0x2d5   : > { %v2991_v46 = vpop.eup %2990  ;;  %v2328_v44 = vsel %vm2264_vm14, %v2989_v37, 0.0  ;;  %vm2270_vm1 = vcmp.lt.s32.totalorder %v2207_v33, %v4574_v26  ;;  %v2209_v47 = vadd.s32 232, %v4779_v12  ;;  %v2210_v30 = vadd.s32 240, %v4779_v12 }
 0x2d6   : > { %v2402_v56 = vadd.f32 %v2401_v1, %v2324_v52  ;;  %v2330_v8 = vsel %vm2266_vm15, %v2991_v46, 0.0  ;;  %vm2272_vm2 = vcmp.lt.s32.totalorder %v2208_v14, %v4574_v26  ;;  %v2211_v60 = vadd.s32 248, %v4779_v12 }
 0x2d7   : > { %v2993_v22 = vpop.eup %2992  ;;  %v2375_v6 = vrot.slane %v4597_v34, 4  ;;  %vm2274_vm3 = vcmp.lt.s32.totalorder %v2209_v47, %v4574_v26  ;;  %vm2276_vm4 = vcmp.lt.s32.totalorder %v2210_v30, %v4574_v26  ;;  %v3120_v24 = vmov 1966171168  }
 0x2d8   : > { %v2403_v48 = vadd.f32 %v2402_v56, %v2326_v31  ;;  %v2332_v11 = vsel %vm2268_vm0, %v2993_v22, 0.0  ;;  %vm2278_vm5 = vcmp.lt.s32.totalorder %v2211_v60, %v4574_v26  ;;  %v2422_v0 = vunpack.c.l.s4 %v3120_v24 }
 0x2d9   : > { %v2995_v49 = vpop.eup %2994  ;;  %v2376_v54 = vadd.f32 %v2375_v6, %v4597_v34  ;;  %v4781_v57 = vlaneseq }
 0x2da   : > { %v2404_v55 = vadd.f32 %v2403_v48, %v2328_v44  ;;  %v2334_v50 = vsel %vm2270_vm1, %v2995_v49, 0.0  ;;  %v2423_v36 = vunpack.c.0.s8 %v2422_v0 }
 0x2db   : > { %v2997_v16 = vpop.eup %2996  ;;  %v2377_v2 = vrot.slane %v2376_v54, 2  ;;  %vm2439_vm6 = vcmp.lt.s32.totalorder %v4781_v57, 256 }
 0x2dc   : > { %v2405_v40 = vadd.f32 %v2404_v55, %v2330_v8  ;;  %v2999_v15 = vpop.eup %2998  ;;  %v2336_v18 = vsel %vm2272_vm2, %v2997_v16, 0.0  ;;  %v2426_v17 = vsub.s32 %v2423_v36, %v4779_v12 }
 0x2dd   : > { %v3001_v23 = vpop.eup %3000  ;;  %v2338_v4 = vsel %vm2274_vm3, %v2999_v15, 0.0  ;;  %v2378_v45 = vadd.f32 %v2377_v2, %v2376_v54 }
 0x2de   : > { %v2406_v3 = vadd.f32 %v2405_v40, %v2332_v11  ;;  %v3003_v5 = vpop.eup %3002  ;;  %v2340_v42 = vsel %vm2276_vm4, %v3001_v23, 0.0 }
 0x2df   : > { %v2342_v7 = vsel %vm2278_vm5, %v3003_v5, 0.0  ;;  %v2379_v20 = vrot.slane %v2378_v45, 1 }
 0x2e0   : > { %v2407_v9 = vadd.f32 %v2406_v3, %v2334_v50 }
 0x2e1   : > { %v2380_v26 = vadd.f32 %v2379_v20, %v2378_v45 }
 0x2e2   : > { %v2408_v21 = vadd.f32 %v2407_v9, %v2336_v18 }
 0x2e4   : > { %v2409_v62 = vadd.f32 %v2408_v21, %v2338_v4 }
 0x2e6   : > { %v2410_v32 = vadd.f32 %v2409_v62, %v2340_v42 }
 0x2e8   : > { %v2411_v63 = vadd.f32 %v2410_v32, %v2342_v7 }
 0x2ea   : > { %v2412_v10 = vrot.slane %v2411_v63, 4 }
 0x2ec   : > { %v2413_v29 = vadd.f32 %v2412_v10, %v2411_v63 }
 0x2ee   : > { %v2414_v27 = vrot.slane %v2413_v29, 2 }
 0x2f0   : > { %v2415_v19 = vadd.f32 %v2414_v27, %v2413_v29 }
 0x2f2   : > { %v2416_v41 = vrot.slane %v2415_v19, 1 }
 0x2f4   : > { %v2417_v34 = vadd.f32 %v2416_v41, %v2415_v19 }
 0x2f6   : > { %v2420_v53 = vcombine.low %v2380_v26, %v2417_v34 }
 0x2f8   : > { %v2427_v61 = vrot.slane %v2420_v53, %v2426_v17 }
 0x2fa   : > { %v2434_v25 = vrot.slane %v2427_v61, %v2426_v17 }
 0x2fc   : > { %v2436_v43 = vadd.f32 %v2434_v25, %v2343_v58 }
 0x2fe   : > { %2441 = vst.msk [vmem:[#allocation2] sm:$0x3] %vm2439_vm6, %v2436_v43 }
 0x2ff PF: > { %p2674_p5 = scmp.ne.s32.totalorder %s3090_s12, 1 }
 0x300   : > { %v2448_v39 = vlaneseq (!%p2674_p5)  ;;  %vm2458_vm7 = vcmask (!%p2674_p5), 1040384  }
 0x301   : > { %2445 = sbr.rel (%p2674_p5) target bundleno = 985 (0x3d9), region = 44 }
 0x302   : > { %v2449_v59 = vshrl.u32 (!%p2674_p5), %v2448_v39, 7 }
 0x304   : > { %v2450_v38 = vsub.s32 (!%p2674_p5), 0, %v2449_v59  ;;  %v2454_v1 = vsub.s32 (!%p2674_p5), 1, %v2449_v59 }
 0x305   : > { %v2446_v35 = vld [vmem:[#allocation2] sm:$0x3] (!%p2674_p5) }
 0x306   : > { %v2451_v12 = vrot.slane (!%p2674_p5), %v2446_v35, %v2450_v38  ;;  %v2455_v51 = vrot.slane (!%p2674_p5), %v2446_v35, %v2454_v1 }
 0x308   : > { %v2459_v13 = vsel %vm2458_vm7, %v2451_v12, 0.0  ;;  %v2460_v52 = vsel %vm2458_vm7, %v2455_v51, 0.0 }
 0x309   : > { %v2461_v37 = vadd.f32 %v2460_v52, %v2459_v13 }
 0x30b   : > { %2462 = vadd.xlane.f32.xlu0 %v2461_v37 }
 0x398   : > { %v2463_v56 = vpop.xlane.xlu0 %2462 }
 0x399   : > { %v2464_v28 = vrot.slane %v2463_v56, 4 }
 0x39b   : > { %v2465_v31 = vadd.f32 %v2464_v28, %v2463_v56 }
 0x39d   : > { %v2466_v46 = vrot.slane %v2465_v31, 2 }
 0x39f   : > { %v2467_v48 = vadd.f32 %v2466_v46, %v2465_v31 }
 0x3a1   : > { %v2468_v33 = vrot.slane %v2467_v48, 1 }
 0x3a3   : > { %v2469_v44 = vadd.f32 %v2468_v33, %v2467_v48 }
 0x3a5   : > { %2684 = vpush %v2469_v44 }
 0x3d6   : > { %s2685_s12 = spop %2684 }
 0x3d7   : > { %v2471_v22 = vstv %s2685_s12 }
 0x3d8   : > { %2472 = vst [vmem:[%s194_s16] sm:$0xff] %v2471_v22 }
 0x3d9 PF: > { %s2676_s17 = sshll.u32 %s3098_s14, 1  ;;  %s2489_s22 = sshll.u32 %s194_s16, 4  ;;  %s4649_s22 = int_to_ptr.vmem [resolvable:$true] %s2489_s22 }
 0x3da   : > { %s2485_s21 = sadd.s32 %s3094_s13, %s2676_s17  ;;  %s4782_s7 = sand.u32 1, %s3082_s10  }
 0x3db   : > { %s2677_s23 = sshll.u32 %s2485_s21, 7  ;;  %s2474_s8 = scalar_lea.sflag [#allocation4], %s4782_s7 }
 0x3dc   : > { %s2487_s6 = scalar_lea.hbm %s4708_s2, %s2677_s23  ;;  %s3004_s19 = scalar_lea.vmem %s4649_s22, 128 }
 0x3dd   : > { %p3005_p8 = scmp.ne.s32.totalorder %s4649_s22, %s3004_s19  ;;  %s3121_s13 = smov [#allocation3]  }
 0x3de   : > { %s3008_s14 = sshll.u32 %s3121_s13, 4  ;;  %s3009_s14 = int_to_ptr.vmem [resolvable:$false] %s3008_s14 }
 0x3df   : > { %p3006_p9 = pnand %p3005_p8, %p3199_p6  ;;  %s3010_s16 = scalar_lea.vmem %s3009_s14, 256 }
 0x3e0   : > { %p3011_p11 = scmp.lt.s32.totalorder %s4649_s22, %s3009_s14  ;;  %p3012_p12 = scmp.lt.s32.totalorder %s3010_s16, %s3004_s19 }
 0x3e1   : > { %p3007_p10 = pneg %p3006_p9 }
 0x3e2   : > { %p3013_p13 = por %p3012_p12, %p3011_p11 }
 0x3e4   : > { %p3014_p0 = pnand %p3013_p13, %p3007_p10 }
 0x3e6   : > { %3017 = shalt.err (!%p3014_p0)
}
 0x3e7   : > { %s3018_s5 = scalar_lea.hbm %s2487_s6, 128  ;;  %s3022_s27 = scalar_lea.hbm %s4708_s2, 512 }
 0x3e8   : > { %p3019_p1 = scmp.ne.s32.totalorder %s2487_s6, %s3018_s5  ;;  %p3023_p4 = scmp.lt.u32.totalorder %s2487_s6, %s4708_s2 }
 0x3e9   : > { %p3024_p5 = scmp.lt.u32.totalorder %s3022_s27, %s3018_s5  ;;  %p3026_p9 = scmp.lt.u32.totalorder %s3018_s5, %s2487_s6 }
 0x3ea   : > { %p3020_p2 = pnand %p3019_p1, %p3199_p6 }
 0x3eb   : > { %p3025_p8 = por %p3024_p5, %p3023_p4 }
 0x3ec   : > { %p3021_p3 = pneg %p3020_p2 }
 0x3ed   : > { %p3027_p11 = por %p3026_p9, %p3025_p8 }
 0x3ef   : > { %p3028_p10 = pnand %p3027_p11, %p3021_p3 }
 0x3f1   : > { %3031 = shalt.err (!%p3028_p10)
}
 0x3f2   : > { %2686 = dma.vmem_to_hbm [thread:$0]  (%p3199_p6), %s4649_s22, 128, %s2487_s6, %s2474_s8  }
 0x3f3 PF: > { %p2692_p12 = scmp.ge.s32.totalorder %s3114_s18, 2  ;;  %s2501_s12 = sand.u32 1, %s3078_s9  }
 0x3f4   : > { %s2502_s17 = scalar_lea.sflag [#allocation4], %s2501_s12 }
 0x3f5   : > { %p2689_p13 = pnand %p2692_p12, %p3206_p7 }
 0x3f7   : > { %3073 = dma.done.wait (!%p2689_p13), %s2502_s17, 128  }
 0x3f8   : > { %3075 = vsyncadd (!%p2689_p13), %s2502_s17, 4294967168  ;;  %s15_s18 = sadd.s32 1, %s3114_s18   ;;  %s4783_s13 = sld [smem:[#allocation6_spill]] }
 0x3f9   : > { %p12_p0 = scmp.ge.s32.totalorder %s15_s18, 10   ;;  %s4784_s14 = sld [smem:[#allocation7_spill]] }
 0x3fa   : > { %s4785_s24 = sld [smem:[#allocation8_spill]]  ;;  %s4786_s16 = sld [smem:[#allocation9_spill]] }
 0x3fb   : > { %s4787_s17 = sld [smem:[#allocation10_spill]]  ;;  %s4788_s9 = smov %s3082_s10 }
 0x3fc   : > { %s4789_s10 = smov %s3086_s11  ;;  %s4790_s11 = smov %s3220_s30 }
 0x3fd   : > { %s4791_s12 = smov %s3102_s15  ;;  %14 = sbr.rel (!%p12_p0) target bundleno = 6 (0x6), region = 82 }
 0x400   : > { %s4792_s15 = smov %s4785_s24 }
 0x404   :  { %2507 = vsyncpa [#allocation4], 1 }
 0x405   :  { %2509 = vsyncpa [#allocation4 + $0x1], 1 }

</bundles_post_ra>
